<compile_context>
chip_gen: v7x
topology: tpu7x:2x2x1
jax: 0.10.0
libtpu: 0.0.40
codegen_flags: <defaults>
</compile_context>

<pallas_src>
import functools

import jax
import jax.numpy as jnp
from jax.experimental import pallas as pl
from jax.experimental.pallas import tpu as pltpu


# Fixed order in which weights are passed to the kernel.
WEIGHT_ORDER = (
    "pmap_w", "pmap_b",
    "wq", "bq", "wk", "bk", "wv", "bv", "wo", "bo",
    "ln1_g", "ln1_b", "w1", "b1", "w2", "b2", "ln2_g", "ln2_b",
)

# Matmul weights are stored/fed in bf16 (halves weight DMA / VMEM footprint,
# feeds the bf16 MXU); biases / LN params / p_map stay f32.
BF16_WEIGHTS = frozenset({"wq", "wk", "wv", "wo", "w1", "w2"})


def _layer_norm(y, g, b, eps):
    mu = jnp.mean(y, axis=-1, keepdims=True)
    var = jnp.mean((y - mu) ** 2, axis=-1, keepdims=True)
    return (y - mu) * jax.lax.rsqrt(var + eps) * g + b


def act_fused_kernel(
    # ---- inputs ----
    data_ref,
    pmap_w_ref, pmap_b_ref,
    wq_ref, bq_ref, wk_ref, bk_ref, wv_ref, bv_ref, wo_ref, bo_ref,
    ln1_g_ref, ln1_b_ref, w1_ref, b1_ref, w2_ref, b2_ref, ln2_g_ref, ln2_b_ref,
    # ---- outputs (resident across the layer axis) ----
    out_ref, rem_ref, nupd_ref,
    # ---- VMEM scratch (persists across the layer axis) ----
    x_sc, ph_sc,
    *, threshold, n_heads, ut_variant, eps=1e-5,
):
    TB, N, D = x_sc.shape
    TBN = TB * N
    dh = D // n_heads
    scale = 1.0 / (dh ** 0.5)
    layer = pl.program_id(1)
    n_layers = pl.num_programs(1)

    # ---- layer 0: load data into VMEM, zero all running state ----
    @pl.when(layer == 0)
    def _init():
        x_sc[...] = data_ref[...]
        ph_sc[...] = jnp.zeros_like(ph_sc)
        out_ref[...] = jnp.zeros_like(out_ref)
        rem_ref[...] = jnp.zeros_like(rem_ref)
        nupd_ref[...] = jnp.zeros_like(nupd_ref)

    x3 = x_sc[...]                         # (TB, N, D)  f32
    x2d = x3.reshape(TBN, D)               # packed rows for the MXU matmuls

    # ---- halting probability: sigmoid(Linear(d_model, 1)), f32 ----
    p = jax.nn.sigmoid(
        jnp.sum(x3 * pmap_w_ref[...], axis=-1, keepdims=True) + pmap_b_ref[...]
    )                                      # (TB, N, 1)

    # ---- ACT bookkeeping (matches reference forward order exactly, f32) ----
    ph = ph_sc[...]
    rem = rem_ref[...]
    nupd = nupd_ref[...]
    out_acc = out_ref[...]

    still = (ph < 1.0).astype(jnp.float32)
    stopped = ((ph + p * still) > threshold).astype(jnp.float32)
    if not ut_variant:
        is_last = (layer == n_layers - 1).astype(jnp.float32)   # stopped.fill_(1)
        stopped = jnp.maximum(stopped, is_last)
    new_halted = stopped * still
    still = (1.0 - stopped) * still
    ph = ph + p * still
    rem = rem + new_halted * (1.0 - ph)
    ph = ph + new_halted * rem
    nupd = nupd + still + new_halted
    uw = p * still + new_halted * rem      # update_weights (TB, N, 1)

    # ---- shared transformer encoder layer (bf16 matmuls, f32 accumulation) --
    xb = x2d.astype(jnp.bfloat16)
    q = jnp.dot(xb, wq_ref[...], preferred_element_type=jnp.float32) + bq_ref[...]
    k = jnp.dot(xb, wk_ref[...], preferred_element_type=jnp.float32) + bk_ref[...]
    v = jnp.dot(xb, wv_ref[...], preferred_element_type=jnp.float32) + bv_ref[...]
    qb = q.astype(jnp.bfloat16)
    kb = k.astype(jnp.bfloat16)
    vb = v.astype(jnp.bfloat16)

    heads = []
    for h in range(n_heads):               # static, unrolled at trace time
        sl = slice(h * dh, (h + 1) * dh)
        qh = qb[:, sl].reshape(TB, N, dh)
        kh = kb[:, sl].reshape(TB, N, dh)
        vh = vb[:, sl].reshape(TB, N, dh)
        # scores batched over the batch dim
        s = jnp.einsum("bqd,bkd->bqk", qh, kh,
                       preferred_element_type=jnp.float32) * scale   # (TB,N,N)
        m = jnp.max(s, axis=-1, keepdims=True)
        e = jnp.exp(s - m)
        denom = jnp.sum(e, axis=-1, keepdims=True)
        oh = jnp.einsum("bqk,bkd->bqd", e.astype(jnp.bfloat16), vh,
                        preferred_element_type=jnp.float32)          # (TB,N,dh)
        # divide once on the (N,dh) output instead of the (N,N) probs; EUP recip
        heads.append(oh * pl.reciprocal(denom, approx=True))
    attn = jnp.concatenate(heads, axis=-1).reshape(TBN, D)
    # single full-depth output projection (instead of per-head wo slices)
    attn = jnp.dot(attn.astype(jnp.bfloat16), wo_ref[...],
                   preferred_element_type=jnp.float32) + bo_ref[...]

    x1 = _layer_norm(x2d + attn, ln1_g_ref[...], ln1_b_ref[...], eps)
    ff = jnp.maximum(
        jnp.dot(x1.astype(jnp.bfloat16), w1_ref[...],
                preferred_element_type=jnp.float32) + b1_ref[...], 0.0)
    ff = jnp.dot(ff.astype(jnp.bfloat16), w2_ref[...],
                 preferred_element_type=jnp.float32) + b2_ref[...]
    x2 = _layer_norm(x1 + ff, ln2_g_ref[...], ln2_b_ref[...], eps)
    x2_3 = x2.reshape(TB, N, D)

    # ---- weighted output accumulation ----
    if ut_variant:
        out_acc = out_acc * (1.0 - uw) + uw * x2_3
    else:
        out_acc = out_acc + uw * x2_3

    # ---- carry state ----
    x_sc[...] = x2_3
    ph_sc[...] = ph
    out_ref[...] = out_acc
    rem_ref[...] = rem
    nupd_ref[...] = nupd


def _prep_weights(params):
    ws = []
    for k in WEIGHT_ORDER:
        v = params[k]
        ws.append(v.astype(jnp.bfloat16 if k in BF16_WEIGHTS else jnp.float32))
    return ws


def act_transformer_forward(data, params, *, n_layers, threshold, n_heads,
                            act_loss_weight, ut_variant=False,
                            batch_block=None):
    """Returns (out_data, act_reg_loss, n_updates). Fully jittable."""
    B, N, D = data.shape
    data = data.astype(jnp.float32)
    TB = B if batch_block is None else batch_block
    assert B % TB == 0 and D % n_heads == 0

    weights = _prep_weights(params)
    kern = functools.partial(act_fused_kernel, threshold=float(threshold),
                             n_heads=n_heads, ut_variant=ut_variant)

    state_spec = pl.BlockSpec((TB, N, D), lambda b, l: (b, 0, 0))
    col_spec = pl.BlockSpec((TB, N, 1), lambda b, l: (b, 0, 0))
    weight_specs = [pl.BlockSpec(w.shape, lambda b, l: (0, 0)) for w in weights]

    out, rem, nupd = pl.pallas_call(
        kern,
        grid=(B // TB, n_layers),
        in_specs=[state_spec] + weight_specs,
        out_specs=[state_spec, col_spec, col_spec],
        out_shape=[
            jax.ShapeDtypeStruct((B, N, D), jnp.float32),
            jax.ShapeDtypeStruct((B, N, 1), jnp.float32),
            jax.ShapeDtypeStruct((B, N, 1), jnp.float32),
        ],
        scratch_shapes=[
            pltpu.VMEM((TB, N, D), jnp.float32),   # running data
            pltpu.VMEM((TB, N, 1), jnp.float32),   # running p_halt
        ],
        compiler_params=pltpu.CompilerParams(
            dimension_semantics=("parallel", "arbitrary"),
            vmem_limit_bytes=48 * 1024 * 1024,
        ),
    )(data, *weights)

    # add_reg(lambda: remainders.mean() * act_loss_weight) equivalent.
    act_reg = jnp.mean(rem) * act_loss_weight
    return out, act_reg, nupd


def init_params(key, d_model, d_ff):
    ks = jax.random.split(key, 10)
    s = 1.0 / jnp.sqrt(jnp.float32(d_model))
    sf = 1.0 / jnp.sqrt(jnp.float32(d_ff))
    return {
        "pmap_w": jax.random.normal(ks[0], (1, d_model), jnp.float32) * s,
        "pmap_b": jnp.zeros((1, 1), jnp.float32),
        "wq": jax.random.normal(ks[1], (d_model, d_model), jnp.float32) * s,
        "bq": jnp.zeros((1, d_model), jnp.float32),
        "wk": jax.random.normal(ks[2], (d_model, d_model), jnp.float32) * s,
        "bk": jnp.zeros((1, d_model), jnp.float32),
        "wv": jax.random.normal(ks[3], (d_model, d_model), jnp.float32) * s,
        "bv": jnp.zeros((1, d_model), jnp.float32),
        "wo": jax.random.normal(ks[4], (d_model, d_model), jnp.float32) * s,
        "bo": jnp.zeros((1, d_model), jnp.float32),
        "ln1_g": jnp.ones((1, d_model), jnp.float32),
        "ln1_b": jnp.zeros((1, d_model), jnp.float32),
        "w1": jax.random.normal(ks[5], (d_model, d_ff), jnp.float32) * s,
        "b1": jnp.zeros((1, d_ff), jnp.float32),
        "w2": jax.random.normal(ks[6], (d_ff, d_model), jnp.float32) * sf,
        "b2": jnp.zeros((1, d_model), jnp.float32),
        "ln2_g": jnp.ones((1, d_model), jnp.float32),
        "ln2_b": jnp.zeros((1, d_model), jnp.float32),
    }


if __name__ == "__main__":
    B, N, D = 2, 8, 32          # batch, seq, d_model
    H, DFF = 4, 64              # heads, FFN width
    N_LAYERS = 3
    THRESHOLD = 0.99
    ACT_LOSS_WEIGHT = 0.01

    key = jax.random.PRNGKey(0)
    k_data, k_params = jax.random.split(key)
    data = jax.random.normal(k_data, (B, N, D), jnp.float32)
    params = init_params(k_params, D, DFF)

    fwd = jax.jit(functools.partial(
        act_transformer_forward,
        n_layers=N_LAYERS, threshold=THRESHOLD, n_heads=H,
        act_loss_weight=ACT_LOSS_WEIGHT, ut_variant=False))

    out, act_reg, n_updates = fwd(data, params)

    jax.block_until_ready(out)
    jax.block_until_ready(act_reg)
    jax.block_until_ready(n_updates)
    print("KERNEL_OK")
</pallas_src>

<mosaic_0001>
module attributes {stable_mosaic.version = 11 : i64} {
  func.func @act_fused_kernel(%arg0: i32, %arg1: i32, %arg2: memref<2x8x32xf32, #tpu.memory_space<vmem>>, %arg3: memref<1x32xf32, #tpu.memory_space<vmem>>, %arg4: memref<1x1xf32, #tpu.memory_space<vmem>>, %arg5: memref<32x32xbf16, #tpu.memory_space<vmem>>, %arg6: memref<1x32xf32, #tpu.memory_space<vmem>>, %arg7: memref<32x32xbf16, #tpu.memory_space<vmem>>, %arg8: memref<1x32xf32, #tpu.memory_space<vmem>>, %arg9: memref<32x32xbf16, #tpu.memory_space<vmem>>, %arg10: memref<1x32xf32, #tpu.memory_space<vmem>>, %arg11: memref<32x32xbf16, #tpu.memory_space<vmem>>, %arg12: memref<1x32xf32, #tpu.memory_space<vmem>>, %arg13: memref<1x32xf32, #tpu.memory_space<vmem>>, %arg14: memref<1x32xf32, #tpu.memory_space<vmem>>, %arg15: memref<32x64xbf16, #tpu.memory_space<vmem>>, %arg16: memref<1x64xf32, #tpu.memory_space<vmem>>, %arg17: memref<64x32xbf16, #tpu.memory_space<vmem>>, %arg18: memref<1x32xf32, #tpu.memory_space<vmem>>, %arg19: memref<1x32xf32, #tpu.memory_space<vmem>>, %arg20: memref<1x32xf32, #tpu.memory_space<vmem>>, %arg21: memref<2x8x32xf32, #tpu.memory_space<vmem>>, %arg22: memref<2x8x1xf32, #tpu.memory_space<vmem>>, %arg23: memref<2x8x1xf32, #tpu.memory_space<vmem>>, %arg24: memref<2x8x32xf32, #tpu.memory_space<vmem>>, %arg25: memref<2x8x1xf32, #tpu.memory_space<vmem>>) attributes {dimension_semantics = [#tpu.dimension_semantics<parallel>, #tpu.dimension_semantics<arbitrary>], iteration_bounds = array<i64: 1, 3>, scalar_prefetch = 0 : i64, scratch_operands = 2 : i64, tpu.core_type = #tpu.core_type<tc>, window_params = [{transform_indices = @transform_0, window_bounds = array<i64: 2, 8, 32>}, {pipeline_mode = #tpu.pipeline_mode<synchronous>, transform_indices = @transform_1, window_bounds = array<i64: 1, 32>}, {pipeline_mode = #tpu.pipeline_mode<synchronous>, transform_indices = @transform_2, window_bounds = array<i64: 1, 1>}, {pipeline_mode = #tpu.pipeline_mode<synchronous>, transform_indices = @transform_3, window_bounds = array<i64: 32, 32>}, {pipeline_mode = #tpu.pipeline_mode<synchronous>, transform_indices = @transform_4, window_bounds = array<i64: 1, 32>}, {pipeline_mode = #tpu.pipeline_mode<synchronous>, transform_indices = @transform_5, window_bounds = array<i64: 32, 32>}, {pipeline_mode = #tpu.pipeline_mode<synchronous>, transform_indices = @transform_6, window_bounds = array<i64: 1, 32>}, {pipeline_mode = #tpu.pipeline_mode<synchronous>, transform_indices = @transform_7, window_bounds = array<i64: 32, 32>}, {pipeline_mode = #tpu.pipeline_mode<synchronous>, transform_indices = @transform_8, window_bounds = array<i64: 1, 32>}, {pipeline_mode = #tpu.pipeline_mode<synchronous>, transform_indices = @transform_9, window_bounds = array<i64: 32, 32>}, {pipeline_mode = #tpu.pipeline_mode<synchronous>, transform_indices = @transform_10, window_bounds = array<i64: 1, 32>}, {pipeline_mode = #tpu.pipeline_mode<synchronous>, transform_indices = @transform_11, window_bounds = array<i64: 1, 32>}, {pipeline_mode = #tpu.pipeline_mode<synchronous>, transform_indices = @transform_12, window_bounds = array<i64: 1, 32>}, {pipeline_mode = #tpu.pipeline_mode<synchronous>, transform_indices = @transform_13, window_bounds = array<i64: 32, 64>}, {pipeline_mode = #tpu.pipeline_mode<synchronous>, transform_indices = @transform_14, window_bounds = array<i64: 1, 64>}, {pipeline_mode = #tpu.pipeline_mode<synchronous>, transform_indices = @transform_15, window_bounds = array<i64: 64, 32>}, {pipeline_mode = #tpu.pipeline_mode<synchronous>, transform_indices = @transform_16, window_bounds = array<i64: 1, 32>}, {pipeline_mode = #tpu.pipeline_mode<synchronous>, transform_indices = @transform_17, window_bounds = array<i64: 1, 32>}, {pipeline_mode = #tpu.pipeline_mode<synchronous>, transform_indices = @transform_18, window_bounds = array<i64: 1, 32>}, {transform_indices = @transform_19, window_bounds = array<i64: 2, 8, 32>}, {transform_indices = @transform_20, window_bounds = array<i64: 2, 8, 1>}, {transform_indices = @transform_21, window_bounds = array<i64: 2, 8, 1>}]} {
    %c0_i32 = arith.constant 0 : i32
    %0 = arith.cmpi eq, %arg1, %c0_i32 : i32
    %1 = arith.extui %0 : i1 to i32
    %c0_i32_0 = arith.constant 0 : i32
    %2 = arith.cmpi ne, %1, %c0_i32_0 : i32
    scf.if %2 {
      %c0_108 = arith.constant 0 : index
      %c0_109 = arith.constant 0 : index
      %c0_110 = arith.constant 0 : index
      %240 = vector.load %arg2[%c0_108, %c0_109, %c0_110] : memref<2x8x32xf32, #tpu.memory_space<vmem>>, vector<2x8x32xf32>
      %c0_111 = arith.constant 0 : index
      %c0_112 = arith.constant 0 : index
      %c0_113 = arith.constant 0 : index
      %241 = vector.load %arg24[%c0_111, %c0_112, %c0_113] : memref<2x8x32xf32, #tpu.memory_space<vmem>>, vector<2x8x32xf32>
      tpu.vector_store %arg24[%c0_111, %c0_112, %c0_113], %240 {strides = array<i32>} : memref<2x8x32xf32, #tpu.memory_space<vmem>>, vector<2x8x32xf32>,
      %cst_114 = arith.constant 0.000000e+00 : f32
      %242 = vector.broadcast %cst_114 : f32 to vector<2x8x1xf32>
      %c0_115 = arith.constant 0 : index
      %c0_116 = arith.constant 0 : index
      %c0_117 = arith.constant 0 : index
      %243 = vector.load %arg25[%c0_115, %c0_116, %c0_117] : memref<2x8x1xf32, #tpu.memory_space<vmem>>, vector<2x8x1xf32>
      tpu.vector_store %arg25[%c0_115, %c0_116, %c0_117], %242 {strides = array<i32>} : memref<2x8x1xf32, #tpu.memory_space<vmem>>, vector<2x8x1xf32>,
      %cst_118 = arith.constant 0.000000e+00 : f32
      %244 = vector.broadcast %cst_118 : f32 to vector<2x8x32xf32>
      %c0_119 = arith.constant 0 : index
      %c0_120 = arith.constant 0 : index
      %c0_121 = arith.constant 0 : index
      %245 = vector.load %arg21[%c0_119, %c0_120, %c0_121] : memref<2x8x32xf32, #tpu.memory_space<vmem>>, vector<2x8x32xf32>
      tpu.vector_store %arg21[%c0_119, %c0_120, %c0_121], %244 {strides = array<i32>} : memref<2x8x32xf32, #tpu.memory_space<vmem>>, vector<2x8x32xf32>,
      %cst_122 = arith.constant 0.000000e+00 : f32
      %246 = vector.broadcast %cst_122 : f32 to vector<2x8x1xf32>
      %c0_123 = arith.constant 0 : index
      %c0_124 = arith.constant 0 : index
      %c0_125 = arith.constant 0 : index
      %247 = vector.load %arg22[%c0_123, %c0_124, %c0_125] : memref<2x8x1xf32, #tpu.memory_space<vmem>>, vector<2x8x1xf32>
      tpu.vector_store %arg22[%c0_123, %c0_124, %c0_125], %246 {strides = array<i32>} : memref<2x8x1xf32, #tpu.memory_space<vmem>>, vector<2x8x1xf32>,
      %cst_126 = arith.constant 0.000000e+00 : f32
      %248 = vector.broadcast %cst_126 : f32 to vector<2x8x1xf32>
      %c0_127 = arith.constant 0 : index
      %c0_128 = arith.constant 0 : index
      %c0_129 = arith.constant 0 : index
      %249 = vector.load %arg23[%c0_127, %c0_128, %c0_129] : memref<2x8x1xf32, #tpu.memory_space<vmem>>, vector<2x8x1xf32>
      tpu.vector_store %arg23[%c0_127, %c0_128, %c0_129], %248 {strides = array<i32>} : memref<2x8x1xf32, #tpu.memory_space<vmem>>, vector<2x8x1xf32>,
    } else {
    }
    %c0 = arith.constant 0 : index
    %c0_1 = arith.constant 0 : index
    %c0_2 = arith.constant 0 : index
    %3 = vector.load %arg24[%c0, %c0_1, %c0_2] : memref<2x8x32xf32, #tpu.memory_space<vmem>>, vector<2x8x32xf32>
    %4 = vector.shape_cast %3 : vector<2x8x32xf32> to vector<16x32xf32>
    %c0_3 = arith.constant 0 : index
    %c0_4 = arith.constant 0 : index
    %5 = vector.load %arg3[%c0_3, %c0_4] : memref<1x32xf32, #tpu.memory_space<vmem>>, vector<1x32xf32>
    %6 = vector.shape_cast %5 : vector<1x32xf32> to vector<1x1x32xf32>
    %7 = vector.broadcast %6 : vector<1x1x32xf32> to vector<2x8x32xf32>
    %8 = arith.mulf %3, %7 : vector<2x8x32xf32>
    %cst = arith.constant dense<0.000000e+00> : vector<2x8xf32>
    %9 = vector.multi_reduction <add>, %8, %cst [2] : vector<2x8x32xf32> to vector<2x8xf32>
    %10 = vector.shape_cast %9 : vector<2x8xf32> to vector<2x8x1xf32>
    %c0_5 = arith.constant 0 : index
    %c0_6 = arith.constant 0 : index
    %11 = vector.load %arg4[%c0_5, %c0_6] : memref<1x1xf32, #tpu.memory_space<vmem>>, vector<1x1xf32>
    %12 = vector.shape_cast %11 : vector<1x1xf32> to vector<1x1x1xf32>
    %13 = vector.broadcast %12 : vector<1x1x1xf32> to vector<2x8x1xf32>
    %14 = arith.addf %10, %13 : vector<2x8x1xf32>
    %15 = arith.negf %14 : vector<2x8x1xf32>
    %16 = math.exp %15 : vector<2x8x1xf32>
    %cst_7 = arith.constant 1.000000e+00 : f32
    %17 = vector.broadcast %cst_7 : f32 to vector<2x8x1xf32>
    %18 = arith.addf %17, %16 : vector<2x8x1xf32>
    %19 = arith.divf %17, %18 : vector<2x8x1xf32>
    %c0_8 = arith.constant 0 : index
    %c0_9 = arith.constant 0 : index
    %c0_10 = arith.constant 0 : index
    %20 = vector.load %arg25[%c0_8, %c0_9, %c0_10] : memref<2x8x1xf32, #tpu.memory_space<vmem>>, vector<2x8x1xf32>
    %c0_11 = arith.constant 0 : index
    %c0_12 = arith.constant 0 : index
    %c0_13 = arith.constant 0 : index
    %21 = vector.load %arg22[%c0_11, %c0_12, %c0_13] : memref<2x8x1xf32, #tpu.memory_space<vmem>>, vector<2x8x1xf32>
    %c0_14 = arith.constant 0 : index
    %c0_15 = arith.constant 0 : index
    %c0_16 = arith.constant 0 : index
    %22 = vector.load %arg23[%c0_14, %c0_15, %c0_16] : memref<2x8x1xf32, #tpu.memory_space<vmem>>, vector<2x8x1xf32>
    %c0_17 = arith.constant 0 : index
    %c0_18 = arith.constant 0 : index
    %c0_19 = arith.constant 0 : index
    %23 = vector.load %arg21[%c0_17, %c0_18, %c0_19] : memref<2x8x32xf32, #tpu.memory_space<vmem>>, vector<2x8x32xf32>
    %cst_20 = arith.constant 1.000000e+00 : f32
    %24 = vector.broadcast %cst_20 : f32 to vector<2x8x1xf32>
    %25 = arith.cmpf olt, %20, %24 : vector<2x8x1xf32>
    %26 = arith.extui %25 : vector<2x8x1xi1> to vector<2x8x1xi32>
    %27 = arith.sitofp %26 : vector<2x8x1xi32> to vector<2x8x1xf32>
    %28 = arith.mulf %19, %27 : vector<2x8x1xf32>
    %29 = arith.addf %20, %28 : vector<2x8x1xf32>
    %cst_21 = arith.constant 9.900000e-01 : f32
    %30 = vector.broadcast %cst_21 : f32 to vector<2x8x1xf32>
    %31 = arith.cmpf ogt, %29, %30 : vector<2x8x1xf32>
    %32 = arith.extui %31 : vector<2x8x1xi1> to vector<2x8x1xi32>
    %33 = arith.sitofp %32 : vector<2x8x1xi32> to vector<2x8x1xf32>
    %c2_i32 = arith.constant 2 : i32
    %34 = arith.cmpi eq, %arg1, %c2_i32 : i32
    %35 = arith.extui %34 : i1 to i32
    %36 = arith.sitofp %35 : i32 to f32
    %37 = vector.broadcast %36 : f32 to vector<2x8x1xf32>
    %38 = arith.maximumf %33, %37 : vector<2x8x1xf32>
    %39 = arith.mulf %38, %27 : vector<2x8x1xf32>
    %cst_22 = arith.constant 1.000000e+00 : f32
    %40 = vector.broadcast %cst_22 : f32 to vector<2x8x1xf32>
    %41 = arith.subf %40, %38 : vector<2x8x1xf32>
    %42 = arith.mulf %41, %27 : vector<2x8x1xf32>
    %43 = arith.mulf %19, %42 : vector<2x8x1xf32>
    %44 = arith.addf %20, %43 : vector<2x8x1xf32>
    %cst_23 = arith.constant 1.000000e+00 : f32
    %45 = vector.broadcast %cst_23 : f32 to vector<2x8x1xf32>
    %46 = arith.subf %45, %44 : vector<2x8x1xf32>
    %47 = arith.mulf %39, %46 : vector<2x8x1xf32>
    %48 = arith.addf %21, %47 : vector<2x8x1xf32>
    %49 = arith.mulf %39, %48 : vector<2x8x1xf32>
    %50 = arith.addf %44, %49 : vector<2x8x1xf32>
    %51 = arith.addf %22, %42 : vector<2x8x1xf32>
    %52 = arith.addf %51, %39 : vector<2x8x1xf32>
    %53 = arith.mulf %19, %42 : vector<2x8x1xf32>
    %54 = arith.mulf %39, %48 : vector<2x8x1xf32>
    %55 = arith.addf %53, %54 : vector<2x8x1xf32>
    %56 = arith.truncf %4 : vector<16x32xf32> to vector<16x32xbf16>
    %c0_24 = arith.constant 0 : index
    %c0_25 = arith.constant 0 : index
    %57 = vector.load %arg5[%c0_24, %c0_25] : memref<32x32xbf16, #tpu.memory_space<vmem>>, vector<32x32xbf16>
    %cst_26 = arith.constant dense<0.000000e+00> : vector<16x32xf32>
    %58 = tpu.matmul %56, %57, %cst_26 {dimension_numbers = #tpu.dot_dimension_numbers<[1], [0], [0], [1], [0, 0, 1, 1], [], []>} : vector<16x32xbf16>, vector<32x32xbf16>, vector<16x32xf32> -> vector<16x32xf32>
    %c0_27 = arith.constant 0 : index
    %c0_28 = arith.constant 0 : index
    %59 = vector.load %arg6[%c0_27, %c0_28] : memref<1x32xf32, #tpu.memory_space<vmem>>, vector<1x32xf32>
    %60 = vector.broadcast %59 : vector<1x32xf32> to vector<16x32xf32>
    %61 = arith.addf %58, %60 : vector<16x32xf32>
    %c0_29 = arith.constant 0 : index
    %c0_30 = arith.constant 0 : index
    %62 = vector.load %arg7[%c0_29, %c0_30] : memref<32x32xbf16, #tpu.memory_space<vmem>>, vector<32x32xbf16>
    %cst_31 = arith.constant dense<0.000000e+00> : vector<16x32xf32>
    %63 = tpu.matmul %56, %62, %cst_31 {dimension_numbers = #tpu.dot_dimension_numbers<[1], [0], [0], [1], [0, 0, 1, 1], [], []>} : vector<16x32xbf16>, vector<32x32xbf16>, vector<16x32xf32> -> vector<16x32xf32>
    %c0_32 = arith.constant 0 : index
    %c0_33 = arith.constant 0 : index
    %64 = vector.load %arg8[%c0_32, %c0_33] : memref<1x32xf32, #tpu.memory_space<vmem>>, vector<1x32xf32>
    %65 = vector.broadcast %64 : vector<1x32xf32> to vector<16x32xf32>
    %66 = arith.addf %63, %65 : vector<16x32xf32>
    %c0_34 = arith.constant 0 : index
    %c0_35 = arith.constant 0 : index
    %67 = vector.load %arg9[%c0_34, %c0_35] : memref<32x32xbf16, #tpu.memory_space<vmem>>, vector<32x32xbf16>
    %cst_36 = arith.constant dense<0.000000e+00> : vector<16x32xf32>
    %68 = tpu.matmul %56, %67, %cst_36 {dimension_numbers = #tpu.dot_dimension_numbers<[1], [0], [0], [1], [0, 0, 1, 1], [], []>} : vector<16x32xbf16>, vector<32x32xbf16>, vector<16x32xf32> -> vector<16x32xf32>
    %c0_37 = arith.constant 0 : index
    %c0_38 = arith.constant 0 : index
    %69 = vector.load %arg10[%c0_37, %c0_38] : memref<1x32xf32, #tpu.memory_space<vmem>>, vector<1x32xf32>
    %70 = vector.broadcast %69 : vector<1x32xf32> to vector<16x32xf32>
    %71 = arith.addf %68, %70 : vector<16x32xf32>
    %72 = arith.truncf %61 : vector<16x32xf32> to vector<16x32xbf16>
    %73 = arith.truncf %66 : vector<16x32xf32> to vector<16x32xbf16>
    %74 = arith.truncf %71 : vector<16x32xf32> to vector<16x32xbf16>
    %75 = vector.extract_strided_slice %72 {offsets = [0, 0], sizes = [16, 8], strides = [1, 1]} : vector<16x32xbf16> to vector<16x8xbf16>
    %76 = vector.shape_cast %75 : vector<16x8xbf16> to vector<2x8x8xbf16>
    %77 = vector.extract_strided_slice %73 {offsets = [0, 0], sizes = [16, 8], strides = [1, 1]} : vector<16x32xbf16> to vector<16x8xbf16>
    %78 = vector.shape_cast %77 : vector<16x8xbf16> to vector<2x8x8xbf16>
    %79 = vector.extract_strided_slice %74 {offsets = [0, 0], sizes = [16, 8], strides = [1, 1]} : vector<16x32xbf16> to vector<16x8xbf16>
    %80 = vector.shape_cast %79 : vector<16x8xbf16> to vector<2x8x8xbf16>
    "tpu.trace_start"() <{level = 10 : i32, message = "bqd,bkd->bqk"}> : () -> ()
    %cst_39 = arith.constant dense<0.000000e+00> : vector<2x8x8xf32>
    %81 = tpu.matmul %76, %78, %cst_39 {dimension_numbers = #tpu.dot_dimension_numbers<[2], [2], [1], [1], [0, 0, 0, 1, 1, 1], [0], [0]>} : vector<2x8x8xbf16>, vector<2x8x8xbf16>, vector<2x8x8xf32> -> vector<2x8x8xf32>
    "tpu.trace_stop"() : () -> ()
    %cst_40 = arith.constant 0.353553385 : f32
    %82 = vector.broadcast %cst_40 : f32 to vector<2x8x8xf32>
    %83 = arith.mulf %81, %82 : vector<2x8x8xf32>
    %cst_41 = arith.constant dense<0xFF800000> : vector<2x8xf32>
    %84 = vector.multi_reduction <maximumf>, %83, %cst_41 [2] : vector<2x8x8xf32> to vector<2x8xf32>
    %85 = vector.shape_cast %84 : vector<2x8xf32> to vector<2x8x1xf32>
    %86 = vector.broadcast %85 : vector<2x8x1xf32> to vector<2x8x8xf32>
    %87 = arith.subf %83, %86 : vector<2x8x8xf32>
    %88 = math.exp %87 : vector<2x8x8xf32>
    %cst_42 = arith.constant dense<0.000000e+00> : vector<2x8xf32>
    %89 = vector.multi_reduction <add>, %88, %cst_42 [2] : vector<2x8x8xf32> to vector<2x8xf32>
    %90 = vector.shape_cast %89 : vector<2x8xf32> to vector<2x8x1xf32>
    %91 = arith.truncf %88 : vector<2x8x8xf32> to vector<2x8x8xbf16>
    "tpu.trace_start"() <{level = 10 : i32, message = "bqk,bkd->bqd"}> : () -> ()
    %cst_43 = arith.constant dense<0.000000e+00> : vector<2x8x8xf32>
    %92 = tpu.matmul %91, %80, %cst_43 {dimension_numbers = #tpu.dot_dimension_numbers<[2], [1], [1], [2], [0, 0, 0, 1, 1, 2], [0], [0]>} : vector<2x8x8xbf16>, vector<2x8x8xbf16>, vector<2x8x8xf32> -> vector<2x8x8xf32>
    "tpu.trace_stop"() : () -> ()
    %93 = tpu.reciprocal %90 {approx = true} : vector<2x8x1xf32> -> vector<2x8x1xf32>
    %94 = vector.broadcast %93 : vector<2x8x1xf32> to vector<2x8x8xf32>
    %95 = arith.mulf %92, %94 : vector<2x8x8xf32>
    %96 = vector.extract_strided_slice %72 {offsets = [0, 8], sizes = [16, 8], strides = [1, 1]} : vector<16x32xbf16> to vector<16x8xbf16>
    %97 = vector.shape_cast %96 : vector<16x8xbf16> to vector<2x8x8xbf16>
    %98 = vector.extract_strided_slice %73 {offsets = [0, 8], sizes = [16, 8], strides = [1, 1]} : vector<16x32xbf16> to vector<16x8xbf16>
    %99 = vector.shape_cast %98 : vector<16x8xbf16> to vector<2x8x8xbf16>
    %100 = vector.extract_strided_slice %74 {offsets = [0, 8], sizes = [16, 8], strides = [1, 1]} : vector<16x32xbf16> to vector<16x8xbf16>
    %101 = vector.shape_cast %100 : vector<16x8xbf16> to vector<2x8x8xbf16>
    "tpu.trace_start"() <{level = 10 : i32, message = "bqd,bkd->bqk"}> : () -> ()
    %cst_44 = arith.constant dense<0.000000e+00> : vector<2x8x8xf32>
    %102 = tpu.matmul %97, %99, %cst_44 {dimension_numbers = #tpu.dot_dimension_numbers<[2], [2], [1], [1], [0, 0, 0, 1, 1, 1], [0], [0]>} : vector<2x8x8xbf16>, vector<2x8x8xbf16>, vector<2x8x8xf32> -> vector<2x8x8xf32>
    "tpu.trace_stop"() : () -> ()
    %cst_45 = arith.constant 0.353553385 : f32
    %103 = vector.broadcast %cst_45 : f32 to vector<2x8x8xf32>
    %104 = arith.mulf %102, %103 : vector<2x8x8xf32>
    %cst_46 = arith.constant dense<0xFF800000> : vector<2x8xf32>
    %105 = vector.multi_reduction <maximumf>, %104, %cst_46 [2] : vector<2x8x8xf32> to vector<2x8xf32>
    %106 = vector.shape_cast %105 : vector<2x8xf32> to vector<2x8x1xf32>
    %107 = vector.broadcast %106 : vector<2x8x1xf32> to vector<2x8x8xf32>
    %108 = arith.subf %104, %107 : vector<2x8x8xf32>
    %109 = math.exp %108 : vector<2x8x8xf32>
    %cst_47 = arith.constant dense<0.000000e+00> : vector<2x8xf32>
    %110 = vector.multi_reduction <add>, %109, %cst_47 [2] : vector<2x8x8xf32> to vector<2x8xf32>
    %111 = vector.shape_cast %110 : vector<2x8xf32> to vector<2x8x1xf32>
    %112 = arith.truncf %109 : vector<2x8x8xf32> to vector<2x8x8xbf16>
    "tpu.trace_start"() <{level = 10 : i32, message = "bqk,bkd->bqd"}> : () -> ()
    %cst_48 = arith.constant dense<0.000000e+00> : vector<2x8x8xf32>
    %113 = tpu.matmul %112, %101, %cst_48 {dimension_numbers = #tpu.dot_dimension_numbers<[2], [1], [1], [2], [0, 0, 0, 1, 1, 2], [0], [0]>} : vector<2x8x8xbf16>, vector<2x8x8xbf16>, vector<2x8x8xf32> -> vector<2x8x8xf32>
    "tpu.trace_stop"() : () -> ()
    %114 = tpu.reciprocal %111 {approx = true} : vector<2x8x1xf32> -> vector<2x8x1xf32>
    %115 = vector.broadcast %114 : vector<2x8x1xf32> to vector<2x8x8xf32>
    %116 = arith.mulf %113, %115 : vector<2x8x8xf32>
    %117 = vector.extract_strided_slice %72 {offsets = [0, 16], sizes = [16, 8], strides = [1, 1]} : vector<16x32xbf16> to vector<16x8xbf16>
    %118 = vector.shape_cast %117 : vector<16x8xbf16> to vector<2x8x8xbf16>
    %119 = vector.extract_strided_slice %73 {offsets = [0, 16], sizes = [16, 8], strides = [1, 1]} : vector<16x32xbf16> to vector<16x8xbf16>
    %120 = vector.shape_cast %119 : vector<16x8xbf16> to vector<2x8x8xbf16>
    %121 = vector.extract_strided_slice %74 {offsets = [0, 16], sizes = [16, 8], strides = [1, 1]} : vector<16x32xbf16> to vector<16x8xbf16>
    %122 = vector.shape_cast %121 : vector<16x8xbf16> to vector<2x8x8xbf16>
    "tpu.trace_start"() <{level = 10 : i32, message = "bqd,bkd->bqk"}> : () -> ()
    %cst_49 = arith.constant dense<0.000000e+00> : vector<2x8x8xf32>
    %123 = tpu.matmul %118, %120, %cst_49 {dimension_numbers = #tpu.dot_dimension_numbers<[2], [2], [1], [1], [0, 0, 0, 1, 1, 1], [0], [0]>} : vector<2x8x8xbf16>, vector<2x8x8xbf16>, vector<2x8x8xf32> -> vector<2x8x8xf32>
    "tpu.trace_stop"() : () -> ()
    %cst_50 = arith.constant 0.353553385 : f32
    %124 = vector.broadcast %cst_50 : f32 to vector<2x8x8xf32>
    %125 = arith.mulf %123, %124 : vector<2x8x8xf32>
    %cst_51 = arith.constant dense<0xFF800000> : vector<2x8xf32>
    %126 = vector.multi_reduction <maximumf>, %125, %cst_51 [2] : vector<2x8x8xf32> to vector<2x8xf32>
    %127 = vector.shape_cast %126 : vector<2x8xf32> to vector<2x8x1xf32>
    %128 = vector.broadcast %127 : vector<2x8x1xf32> to vector<2x8x8xf32>
    %129 = arith.subf %125, %128 : vector<2x8x8xf32>
    %130 = math.exp %129 : vector<2x8x8xf32>
    %cst_52 = arith.constant dense<0.000000e+00> : vector<2x8xf32>
    %131 = vector.multi_reduction <add>, %130, %cst_52 [2] : vector<2x8x8xf32> to vector<2x8xf32>
    %132 = vector.shape_cast %131 : vector<2x8xf32> to vector<2x8x1xf32>
    %133 = arith.truncf %130 : vector<2x8x8xf32> to vector<2x8x8xbf16>
    "tpu.trace_start"() <{level = 10 : i32, message = "bqk,bkd->bqd"}> : () -> ()
    %cst_53 = arith.constant dense<0.000000e+00> : vector<2x8x8xf32>
    %134 = tpu.matmul %133, %122, %cst_53 {dimension_numbers = #tpu.dot_dimension_numbers<[2], [1], [1], [2], [0, 0, 0, 1, 1, 2], [0], [0]>} : vector<2x8x8xbf16>, vector<2x8x8xbf16>, vector<2x8x8xf32> -> vector<2x8x8xf32>
    "tpu.trace_stop"() : () -> ()
    %135 = tpu.reciprocal %132 {approx = true} : vector<2x8x1xf32> -> vector<2x8x1xf32>
    %136 = vector.broadcast %135 : vector<2x8x1xf32> to vector<2x8x8xf32>
    %137 = arith.mulf %134, %136 : vector<2x8x8xf32>
    %138 = vector.extract_strided_slice %72 {offsets = [0, 24], sizes = [16, 8], strides = [1, 1]} : vector<16x32xbf16> to vector<16x8xbf16>
    %139 = vector.shape_cast %138 : vector<16x8xbf16> to vector<2x8x8xbf16>
    %140 = vector.extract_strided_slice %73 {offsets = [0, 24], sizes = [16, 8], strides = [1, 1]} : vector<16x32xbf16> to vector<16x8xbf16>
    %141 = vector.shape_cast %140 : vector<16x8xbf16> to vector<2x8x8xbf16>
    %142 = vector.extract_strided_slice %74 {offsets = [0, 24], sizes = [16, 8], strides = [1, 1]} : vector<16x32xbf16> to vector<16x8xbf16>
    %143 = vector.shape_cast %142 : vector<16x8xbf16> to vector<2x8x8xbf16>
    "tpu.trace_start"() <{level = 10 : i32, message = "bqd,bkd->bqk"}> : () -> ()
    %cst_54 = arith.constant dense<0.000000e+00> : vector<2x8x8xf32>
    %144 = tpu.matmul %139, %141, %cst_54 {dimension_numbers = #tpu.dot_dimension_numbers<[2], [2], [1], [1], [0, 0, 0, 1, 1, 1], [0], [0]>} : vector<2x8x8xbf16>, vector<2x8x8xbf16>, vector<2x8x8xf32> -> vector<2x8x8xf32>
    "tpu.trace_stop"() : () -> ()
    %cst_55 = arith.constant 0.353553385 : f32
    %145 = vector.broadcast %cst_55 : f32 to vector<2x8x8xf32>
    %146 = arith.mulf %144, %145 : vector<2x8x8xf32>
    %cst_56 = arith.constant dense<0xFF800000> : vector<2x8xf32>
    %147 = vector.multi_reduction <maximumf>, %146, %cst_56 [2] : vector<2x8x8xf32> to vector<2x8xf32>
    %148 = vector.shape_cast %147 : vector<2x8xf32> to vector<2x8x1xf32>
    %149 = vector.broadcast %148 : vector<2x8x1xf32> to vector<2x8x8xf32>
    %150 = arith.subf %146, %149 : vector<2x8x8xf32>
    %151 = math.exp %150 : vector<2x8x8xf32>
    %cst_57 = arith.constant dense<0.000000e+00> : vector<2x8xf32>
    %152 = vector.multi_reduction <add>, %151, %cst_57 [2] : vector<2x8x8xf32> to vector<2x8xf32>
    %153 = vector.shape_cast %152 : vector<2x8xf32> to vector<2x8x1xf32>
    %154 = arith.truncf %151 : vector<2x8x8xf32> to vector<2x8x8xbf16>
    "tpu.trace_start"() <{level = 10 : i32, message = "bqk,bkd->bqd"}> : () -> ()
    %cst_58 = arith.constant dense<0.000000e+00> : vector<2x8x8xf32>
    %155 = tpu.matmul %154, %143, %cst_58 {dimension_numbers = #tpu.dot_dimension_numbers<[2], [1], [1], [2], [0, 0, 0, 1, 1, 2], [0], [0]>} : vector<2x8x8xbf16>, vector<2x8x8xbf16>, vector<2x8x8xf32> -> vector<2x8x8xf32>
    "tpu.trace_stop"() : () -> ()
    %156 = tpu.reciprocal %153 {approx = true} : vector<2x8x1xf32> -> vector<2x8x1xf32>
    %157 = vector.broadcast %156 : vector<2x8x1xf32> to vector<2x8x8xf32>
    %158 = arith.mulf %155, %157 : vector<2x8x8xf32>
    %159 = tpu.concatenate %95, %116, %137, %158 in 2 : vector<2x8x8xf32>, vector<2x8x8xf32>, vector<2x8x8xf32>, vector<2x8x8xf32> -> vector<2x8x32xf32>
    %160 = vector.shape_cast %159 : vector<2x8x32xf32> to vector<16x32xf32>
    %161 = arith.truncf %160 : vector<16x32xf32> to vector<16x32xbf16>
    %c0_59 = arith.constant 0 : index
    %c0_60 = arith.constant 0 : index
    %162 = vector.load %arg11[%c0_59, %c0_60] : memref<32x32xbf16, #tpu.memory_space<vmem>>, vector<32x32xbf16>
    %cst_61 = arith.constant dense<0.000000e+00> : vector<16x32xf32>
    %163 = tpu.matmul %161, %162, %cst_61 {dimension_numbers = #tpu.dot_dimension_numbers<[1], [0], [0], [1], [0, 0, 1, 1], [], []>} : vector<16x32xbf16>, vector<32x32xbf16>, vector<16x32xf32> -> vector<16x32xf32>
    %c0_62 = arith.constant 0 : index
    %c0_63 = arith.constant 0 : index
    %164 = vector.load %arg12[%c0_62, %c0_63] : memref<1x32xf32, #tpu.memory_space<vmem>>, vector<1x32xf32>
    %165 = vector.broadcast %164 : vector<1x32xf32> to vector<16x32xf32>
    %166 = arith.addf %163, %165 : vector<16x32xf32>
    %167 = arith.addf %4, %166 : vector<16x32xf32>
    %c0_64 = arith.constant 0 : index
    %c0_65 = arith.constant 0 : index
    %168 = vector.load %arg13[%c0_64, %c0_65] : memref<1x32xf32, #tpu.memory_space<vmem>>, vector<1x32xf32>
    %c0_66 = arith.constant 0 : index
    %c0_67 = arith.constant 0 : index
    %169 = vector.load %arg14[%c0_66, %c0_67] : memref<1x32xf32, #tpu.memory_space<vmem>>, vector<1x32xf32>
    %cst_68 = arith.constant dense<0.000000e+00> : vector<16xf32>
    %170 = vector.multi_reduction <add>, %167, %cst_68 [1] : vector<16x32xf32> to vector<16xf32>
    %171 = vector.shape_cast %170 : vector<16xf32> to vector<16x1xf32>
    %cst_69 = arith.constant 3.200000e+01 : f32
    %172 = vector.broadcast %cst_69 : f32 to vector<16x1xf32>
    %173 = arith.divf %171, %172 : vector<16x1xf32>
    %174 = vector.broadcast %173 : vector<16x1xf32> to vector<16x32xf32>
    %175 = arith.subf %167, %174 : vector<16x32xf32>
    %176 = arith.mulf %175, %175 : vector<16x32xf32>
    %cst_70 = arith.constant dense<0.000000e+00> : vector<16xf32>
    %177 = vector.multi_reduction <add>, %176, %cst_70 [1] : vector<16x32xf32> to vector<16xf32>
    %178 = vector.shape_cast %177 : vector<16xf32> to vector<16x1xf32>
    %cst_71 = arith.constant 3.200000e+01 : f32
    %179 = vector.broadcast %cst_71 : f32 to vector<16x1xf32>
    %180 = arith.divf %178, %179 : vector<16x1xf32>
    %181 = vector.broadcast %173 : vector<16x1xf32> to vector<16x32xf32>
    %182 = arith.subf %167, %181 : vector<16x32xf32>
    %cst_72 = arith.constant 9.99999974E-6 : f32
    %183 = vector.broadcast %cst_72 : f32 to vector<16x1xf32>
    %184 = arith.addf %180, %183 : vector<16x1xf32>
    %185 = math.rsqrt %184 : vector<16x1xf32>
    %186 = vector.broadcast %185 : vector<16x1xf32> to vector<16x32xf32>
    %187 = arith.mulf %182, %186 : vector<16x32xf32>
    %188 = vector.broadcast %168 : vector<1x32xf32> to vector<16x32xf32>
    %189 = arith.mulf %187, %188 : vector<16x32xf32>
    %190 = vector.broadcast %169 : vector<1x32xf32> to vector<16x32xf32>
    %191 = arith.addf %189, %190 : vector<16x32xf32>
    %192 = arith.truncf %191 : vector<16x32xf32> to vector<16x32xbf16>
    %c0_73 = arith.constant 0 : index
    %c0_74 = arith.constant 0 : index
    %193 = vector.load %arg15[%c0_73, %c0_74] : memref<32x64xbf16, #tpu.memory_space<vmem>>, vector<32x64xbf16>
    %cst_75 = arith.constant dense<0.000000e+00> : vector<16x64xf32>
    %194 = tpu.matmul %192, %193, %cst_75 {dimension_numbers = #tpu.dot_dimension_numbers<[1], [0], [0], [1], [0, 0, 1, 1], [], []>} : vector<16x32xbf16>, vector<32x64xbf16>, vector<16x64xf32> -> vector<16x64xf32>
    %c0_76 = arith.constant 0 : index
    %c0_77 = arith.constant 0 : index
    %195 = vector.load %arg16[%c0_76, %c0_77] : memref<1x64xf32, #tpu.memory_space<vmem>>, vector<1x64xf32>
    %196 = vector.broadcast %195 : vector<1x64xf32> to vector<16x64xf32>
    %197 = arith.addf %194, %196 : vector<16x64xf32>
    %cst_78 = arith.constant 0.000000e+00 : f32
    %198 = vector.broadcast %cst_78 : f32 to vector<16x64xf32>
    %199 = arith.maximumf %197, %198 : vector<16x64xf32>
    %200 = arith.truncf %199 : vector<16x64xf32> to vector<16x64xbf16>
    %c0_79 = arith.constant 0 : index
    %c0_80 = arith.constant 0 : index
    %201 = vector.load %arg17[%c0_79, %c0_80] : memref<64x32xbf16, #tpu.memory_space<vmem>>, vector<64x32xbf16>
    %cst_81 = arith.constant dense<0.000000e+00> : vector<16x32xf32>
    %202 = tpu.matmul %200, %201, %cst_81 {dimension_numbers = #tpu.dot_dimension_numbers<[1], [0], [0], [1], [0, 0, 1, 1], [], []>} : vector<16x64xbf16>, vector<64x32xbf16>, vector<16x32xf32> -> vector<16x32xf32>
    %c0_82 = arith.constant 0 : index
    %c0_83 = arith.constant 0 : index
    %203 = vector.load %arg18[%c0_82, %c0_83] : memref<1x32xf32, #tpu.memory_space<vmem>>, vector<1x32xf32>
    %204 = vector.broadcast %203 : vector<1x32xf32> to vector<16x32xf32>
    %205 = arith.addf %202, %204 : vector<16x32xf32>
    %206 = arith.addf %191, %205 : vector<16x32xf32>
    %c0_84 = arith.constant 0 : index
    %c0_85 = arith.constant 0 : index
    %207 = vector.load %arg19[%c0_84, %c0_85] : memref<1x32xf32, #tpu.memory_space<vmem>>, vector<1x32xf32>
    %c0_86 = arith.constant 0 : index
    %c0_87 = arith.constant 0 : index
    %208 = vector.load %arg20[%c0_86, %c0_87] : memref<1x32xf32, #tpu.memory_space<vmem>>, vector<1x32xf32>
    %cst_88 = arith.constant dense<0.000000e+00> : vector<16xf32>
    %209 = vector.multi_reduction <add>, %206, %cst_88 [1] : vector<16x32xf32> to vector<16xf32>
    %210 = vector.shape_cast %209 : vector<16xf32> to vector<16x1xf32>
    %cst_89 = arith.constant 3.200000e+01 : f32
    %211 = vector.broadcast %cst_89 : f32 to vector<16x1xf32>
    %212 = arith.divf %210, %211 : vector<16x1xf32>
    %213 = vector.broadcast %212 : vector<16x1xf32> to vector<16x32xf32>
    %214 = arith.subf %206, %213 : vector<16x32xf32>
    %215 = arith.mulf %214, %214 : vector<16x32xf32>
    %cst_90 = arith.constant dense<0.000000e+00> : vector<16xf32>
    %216 = vector.multi_reduction <add>, %215, %cst_90 [1] : vector<16x32xf32> to vector<16xf32>
    %217 = vector.shape_cast %216 : vector<16xf32> to vector<16x1xf32>
    %cst_91 = arith.constant 3.200000e+01 : f32
    %218 = vector.broadcast %cst_91 : f32 to vector<16x1xf32>
    %219 = arith.divf %217, %218 : vector<16x1xf32>
    %220 = vector.broadcast %212 : vector<16x1xf32> to vector<16x32xf32>
    %221 = arith.subf %206, %220 : vector<16x32xf32>
    %cst_92 = arith.constant 9.99999974E-6 : f32
    %222 = vector.broadcast %cst_92 : f32 to vector<16x1xf32>
    %223 = arith.addf %219, %222 : vector<16x1xf32>
    %224 = math.rsqrt %223 : vector<16x1xf32>
    %225 = vector.broadcast %224 : vector<16x1xf32> to vector<16x32xf32>
    %226 = arith.mulf %221, %225 : vector<16x32xf32>
    %227 = vector.broadcast %207 : vector<1x32xf32> to vector<16x32xf32>
    %228 = arith.mulf %226, %227 : vector<16x32xf32>
    %229 = vector.broadcast %208 : vector<1x32xf32> to vector<16x32xf32>
    %230 = arith.addf %228, %229 : vector<16x32xf32>
    %231 = vector.shape_cast %230 : vector<16x32xf32> to vector<2x8x32xf32>
    %232 = vector.broadcast %55 : vector<2x8x1xf32> to vector<2x8x32xf32>
    %233 = arith.mulf %232, %231 : vector<2x8x32xf32>
    %234 = arith.addf %23, %233 : vector<2x8x32xf32>
    %c0_93 = arith.constant 0 : index
    %c0_94 = arith.constant 0 : index
    %c0_95 = arith.constant 0 : index
    %235 = vector.load %arg24[%c0_93, %c0_94, %c0_95] : memref<2x8x32xf32, #tpu.memory_space<vmem>>, vector<2x8x32xf32>
    tpu.vector_store %arg24[%c0_93, %c0_94, %c0_95], %231 {strides = array<i32>} : memref<2x8x32xf32, #tpu.memory_space<vmem>>, vector<2x8x32xf32>,
    %c0_96 = arith.constant 0 : index
    %c0_97 = arith.constant 0 : index
    %c0_98 = arith.constant 0 : index
    %236 = vector.load %arg25[%c0_96, %c0_97, %c0_98] : memref<2x8x1xf32, #tpu.memory_space<vmem>>, vector<2x8x1xf32>
    tpu.vector_store %arg25[%c0_96, %c0_97, %c0_98], %50 {strides = array<i32>} : memref<2x8x1xf32, #tpu.memory_space<vmem>>, vector<2x8x1xf32>,
    %c0_99 = arith.constant 0 : index
    %c0_100 = arith.constant 0 : index
    %c0_101 = arith.constant 0 : index
    %237 = vector.load %arg21[%c0_99, %c0_100, %c0_101] : memref<2x8x32xf32, #tpu.memory_space<vmem>>, vector<2x8x32xf32>
    tpu.vector_store %arg21[%c0_99, %c0_100, %c0_101], %234 {strides = array<i32>} : memref<2x8x32xf32, #tpu.memory_space<vmem>>, vector<2x8x32xf32>,
    %c0_102 = arith.constant 0 : index
    %c0_103 = arith.constant 0 : index
    %c0_104 = arith.constant 0 : index
    %238 = vector.load %arg22[%c0_102, %c0_103, %c0_104] : memref<2x8x1xf32, #tpu.memory_space<vmem>>, vector<2x8x1xf32>
    tpu.vector_store %arg22[%c0_102, %c0_103, %c0_104], %48 {strides = array<i32>} : memref<2x8x1xf32, #tpu.memory_space<vmem>>, vector<2x8x1xf32>,
    %c0_105 = arith.constant 0 : index
    %c0_106 = arith.constant 0 : index
    %c0_107 = arith.constant 0 : index
    %239 = vector.load %arg23[%c0_105, %c0_106, %c0_107] : memref<2x8x1xf32, #tpu.memory_space<vmem>>, vector<2x8x1xf32>
    tpu.vector_store %arg23[%c0_105, %c0_106, %c0_107], %52 {strides = array<i32>} : memref<2x8x1xf32, #tpu.memory_space<vmem>>, vector<2x8x1xf32>,
    return
  }
  func.func @transform_0(%arg0: i32, %arg1: i32) -> (i32, i32, i32) {
    %c0_i32 = arith.constant 0 : i32
    %c0_i32_0 = arith.constant 0 : i32
    %c0_i32_1 = arith.constant 0 : i32
    return %arg0, %c0_i32, %c0_i32_0 : i32, i32, i32
  }
  func.func @transform_1(%arg0: i32, %arg1: i32) -> (i32, i32) {
    %c0_i32 = arith.constant 0 : i32
    %c0_i32_0 = arith.constant 0 : i32
    %c0_i32_1 = arith.constant 0 : i32
    return %c0_i32, %c0_i32_0 : i32, i32
  }
  func.func @transform_2(%arg0: i32, %arg1: i32) -> (i32, i32) {
    %c0_i32 = arith.constant 0 : i32
    %c0_i32_0 = arith.constant 0 : i32
    %c0_i32_1 = arith.constant 0 : i32
    return %c0_i32, %c0_i32_0 : i32, i32
  }
  func.func @transform_3(%arg0: i32, %arg1: i32) -> (i32, i32) {
    %c0_i32 = arith.constant 0 : i32
    %c0_i32_0 = arith.constant 0 : i32
    %c0_i32_1 = arith.constant 0 : i32
    return %c0_i32, %c0_i32_0 : i32, i32
  }
  func.func @transform_4(%arg0: i32, %arg1: i32) -> (i32, i32) {
    %c0_i32 = arith.constant 0 : i32
    %c0_i32_0 = arith.constant 0 : i32
    %c0_i32_1 = arith.constant 0 : i32
    return %c0_i32, %c0_i32_0 : i32, i32
  }
  func.func @transform_5(%arg0: i32, %arg1: i32) -> (i32, i32) {
    %c0_i32 = arith.constant 0 : i32
    %c0_i32_0 = arith.constant 0 : i32
    %c0_i32_1 = arith.constant 0 : i32
    return %c0_i32, %c0_i32_0 : i32, i32
  }
  func.func @transform_6(%arg0: i32, %arg1: i32) -> (i32, i32) {
    %c0_i32 = arith.constant 0 : i32
    %c0_i32_0 = arith.constant 0 : i32
    %c0_i32_1 = arith.constant 0 : i32
    return %c0_i32, %c0_i32_0 : i32, i32
  }
  func.func @transform_7(%arg0: i32, %arg1: i32) -> (i32, i32) {
    %c0_i32 = arith.constant 0 : i32
    %c0_i32_0 = arith.constant 0 : i32
    %c0_i32_1 = arith.constant 0 : i32
    return %c0_i32, %c0_i32_0 : i32, i32
  }
  func.func @transform_8(%arg0: i32, %arg1: i32) -> (i32, i32) {
    %c0_i32 = arith.constant 0 : i32
    %c0_i32_0 = arith.constant 0 : i32
    %c0_i32_1 = arith.constant 0 : i32
    return %c0_i32, %c0_i32_0 : i32, i32
  }
  func.func @transform_9(%arg0: i32, %arg1: i32) -> (i32, i32) {
    %c0_i32 = arith.constant 0 : i32
    %c0_i32_0 = arith.constant 0 : i32
    %c0_i32_1 = arith.constant 0 : i32
    return %c0_i32, %c0_i32_0 : i32, i32
  }
  func.func @transform_10(%arg0: i32, %arg1: i32) -> (i32, i32) {
    %c0_i32 = arith.constant 0 : i32
    %c0_i32_0 = arith.constant 0 : i32
    %c0_i32_1 = arith.constant 0 : i32
    return %c0_i32, %c0_i32_0 : i32, i32
  }
  func.func @transform_11(%arg0: i32, %arg1: i32) -> (i32, i32) {
    %c0_i32 = arith.constant 0 : i32
    %c0_i32_0 = arith.constant 0 : i32
    %c0_i32_1 = arith.constant 0 : i32
    return %c0_i32, %c0_i32_0 : i32, i32
  }
  func.func @transform_12(%arg0: i32, %arg1: i32) -> (i32, i32) {
    %c0_i32 = arith.constant 0 : i32
    %c0_i32_0 = arith.constant 0 : i32
    %c0_i32_1 = arith.constant 0 : i32
    return %c0_i32, %c0_i32_0 : i32, i32
  }
  func.func @transform_13(%arg0: i32, %arg1: i32) -> (i32, i32) {
    %c0_i32 = arith.constant 0 : i32
    %c0_i32_0 = arith.constant 0 : i32
    %c0_i32_1 = arith.constant 0 : i32
    return %c0_i32, %c0_i32_0 : i32, i32
  }
  func.func @transform_14(%arg0: i32, %arg1: i32) -> (i32, i32) {
    %c0_i32 = arith.constant 0 : i32
    %c0_i32_0 = arith.constant 0 : i32
    %c0_i32_1 = arith.constant 0 : i32
    return %c0_i32, %c0_i32_0 : i32, i32
  }
  func.func @transform_15(%arg0: i32, %arg1: i32) -> (i32, i32) {
    %c0_i32 = arith.constant 0 : i32
    %c0_i32_0 = arith.constant 0 : i32
    %c0_i32_1 = arith.constant 0 : i32
    return %c0_i32, %c0_i32_0 : i32, i32
  }
  func.func @transform_16(%arg0: i32, %arg1: i32) -> (i32, i32) {
    %c0_i32 = arith.constant 0 : i32
    %c0_i32_0 = arith.constant 0 : i32
    %c0_i32_1 = arith.constant 0 : i32
    return %c0_i32, %c0_i32_0 : i32, i32
  }
  func.func @transform_17(%arg0: i32, %arg1: i32) -> (i32, i32) {
    %c0_i32 = arith.constant 0 : i32
    %c0_i32_0 = arith.constant 0 : i32
    %c0_i32_1 = arith.constant 0 : i32
    return %c0_i32, %c0_i32_0 : i32, i32
  }
  func.func @transform_18(%arg0: i32, %arg1: i32) -> (i32, i32) {
    %c0_i32 = arith.constant 0 : i32
    %c0_i32_0 = arith.constant 0 : i32
    %c0_i32_1 = arith.constant 0 : i32
    return %c0_i32, %c0_i32_0 : i32, i32
  }
  func.func @transform_19(%arg0: i32, %arg1: i32) -> (i32, i32, i32) {
    %c0_i32 = arith.constant 0 : i32
    %c0_i32_0 = arith.constant 0 : i32
    %c0_i32_1 = arith.constant 0 : i32
    return %arg0, %c0_i32, %c0_i32_0 : i32, i32, i32
  }
  func.func @transform_20(%arg0: i32, %arg1: i32) -> (i32, i32, i32) {
    %c0_i32 = arith.constant 0 : i32
    %c0_i32_0 = arith.constant 0 : i32
    %c0_i32_1 = arith.constant 0 : i32
    return %arg0, %c0_i32, %c0_i32_0 : i32, i32, i32
  }
  func.func @transform_21(%arg0: i32, %arg1: i32) -> (i32, i32, i32) {
    %c0_i32 = arith.constant 0 : i32
    %c0_i32_0 = arith.constant 0 : i32
    %c0_i32_1 = arith.constant 0 : i32
    return %arg0, %c0_i32, %c0_i32_0 : i32, i32, i32
  }
}

</mosaic_0001>

<bundles_post_ra>
// kernel: act_transformer_forward.1
= control target key start
LH: loop header
LB: loop body
LE: loop exit
PB: predicated region body
PF: predicated region fallthrough
CT: control target
= control target key end

     0   :  { %s3413_s0 = inlined_call_operand.vmem [shape: f32[2,8,32], index: 0, kind: input, shape index: {}]   ;;  %s3414_s1 = inlined_call_operand.vmem [shape: f32[1,32], index: 1, kind: input, shape index: {}]   ;;  %s3415_s2 = inlined_call_operand.<no memory space> [shape: f32[1,1], index: 2, kind: input, shape index: {}]   ;;  %s3416_s3 = inlined_call_operand.vmem [shape: bf16[32,32], index: 3, kind: input, shape index: {}]   ;;  %s3417_s4 = inlined_call_operand.vmem [shape: f32[1,32], index: 4, kind: input, shape index: {}]   ;;  %s3418_s5 = inlined_call_operand.vmem [shape: bf16[32,32], index: 5, kind: input, shape index: {}]   ;;  %s3419_s6 = inlined_call_operand.vmem [shape: f32[1,32], index: 6, kind: input, shape index: {}]   ;;  %s3420_s7 = inlined_call_operand.vmem [shape: bf16[32,32], index: 7, kind: input, shape index: {}]   ;;  %s3421_s8 = inlined_call_operand.vmem [shape: f32[1,32], index: 8, kind: input, shape index: {}]   ;;  %s3422_s9 = inlined_call_operand.vmem [shape: bf16[32,32], index: 9, kind: input, shape index: {}]   ;;  %s3423_s10 = inlined_call_operand.vmem [shape: f32[1,32], index: 10, kind: input, shape index: {}]   ;;  %s3424_s11 = inlined_call_operand.vmem [shape: f32[1,32], index: 11, kind: input, shape index: {}]   ;;  %s3425_s12 = inlined_call_operand.vmem [shape: f32[1,32], index: 12, kind: input, shape index: {}]   ;;  %s3426_s13 = inlined_call_operand.vmem [shape: bf16[32,64], index: 13, kind: input, shape index: {}]   ;;  %s3427_s14 = inlined_call_operand.vmem [shape: f32[1,64], index: 14, kind: input, shape index: {}]   ;;  %s3428_s15 = inlined_call_operand.vmem [shape: bf16[64,32], index: 15, kind: input, shape index: {}]   ;;  %s3429_s16 = inlined_call_operand.vmem [shape: f32[1,32], index: 16, kind: input, shape index: {}]   ;;  %s3430_s17 = inlined_call_operand.vmem [shape: f32[1,32], index: 17, kind: input, shape index: {}]   ;;  %s3431_s18 = inlined_call_operand.vmem [shape: f32[1,32], index: 18, kind: input, shape index: {}]   ;;  %s3432_s19 = inlined_call_operand.hbm [shape: f32[2,8,32], index: 19, kind: output, shape index: {0}]   ;;  %s3433_s20 = inlined_call_operand.vmem [shape: f32[2,8,1], index: 20, kind: output, shape index: {1}]   ;;  %s3434_s21 = inlined_call_operand.vmem [shape: f32[2,8,1], index: 21, kind: output, shape index: {2}]  }
   0x1   :  { %3441 = sst [smem:[#allocation8_spill]] %s3413_s0 }
   0x2   :  { %3442 = sst [smem:[#allocation9_spill]] %s3414_s1 }
   0x3   :  { %3443 = sst [smem:[#allocation10_spill]] %s3415_s2 }
   0x4   :  { %3444 = sst [smem:[#allocation11_spill]] %s3416_s3  ;;  %s3447_s26 = sld [smem:[#allocation10_spill]] }
   0x5   :  { %3445 = sst [smem:[#allocation12_spill]] %s3417_s4 }
   0x6   :  { %3446 = sst [smem:[#allocation13_spill]] %s3418_s5 }
   0xa   :  { %v27_v0 = vstv %s3447_s26 }
   0xb   :  { %28 = vst [vmem:[#allocation4] sm:$0x1] %v27_v0 }
   0xc   :  { %29 = vsyncpa [#allocation6], 0  ;;  %s2977_s27 = smov 0   ;;  %s2979_s3 = smov 0  }
   0xd   :  { %s2981_s28 = smov 0  }
   0xe LB: > { %s44_s0 = sadd.s32 1, %s2846_s3  ;;  %p2401_p1 = scmp.ge.s32.totalorder %s2850_s28, 1  ;;  %s2850_s28 = sphi %s2981_s28, %s35_s28   ;;  %s2846_s3 = sphi %s2979_s3, %s3457_s3   ;;  %s2842_s27 = sphi %s2977_s27, %s3456_s27  }
   0xf   : > { %p45_p0 = scmp.ge.s32.totalorder %s44_s0, 3  ;;  %p608_p2 = scmp.lt.s32.totalorder %s2850_s28, 4 }
  0x11   : > { %s3459_s0 = smov (%p45_p0, %s44_s0), 0  ;;  %p609_p3 = pnand %p2401_p1, %p608_p2 }
  0x12   : > { %p2402_p4 = scmp.ne.s32.totalorder (!%p609_p3), %s2842_s27, 0 }
  0x13   : > { %612 = sbr.rel (%p609_p3) target bundleno = 3438 (0xd6e), region = 96 }
  0x1a   : > { %696 = sbr.rel (%p2402_p4) target bundleno = 34 (0x22), region = 100  ;;  %s3448_s5 = sld [smem:[#allocation8_spill]] (!%p2402_p4)  ;;  %vm699_vm0 = vcmask (!%p2402_p4), 261120   ;;  %vm702_vm1 = vcmask (!%p2402_p4), 7168   ;;  %v2852_v3 = vmov (!%p2402_p4), 0.0  }
  0x1b   : > { %703 = vst.msk [vmem:[#allocation3] sm:$0xff] (!%p2402_p4), %vm702_vm1, %v2852_v3  ;;  %704 = vst.msk [vmem:[#allocation3 + $0x8] sm:$0xff] (!%p2402_p4), %vm702_vm1, %v2852_v3 }
  0x1c   : > { %705 = vst.msk [vmem:[#allocation5] sm:$0xff] (!%p2402_p4), %vm699_vm0, %v2852_v3  ;;  %706 = vst.msk [vmem:[#allocation5 + $0x8] sm:$0xff] (!%p2402_p4), %vm699_vm0, %v2852_v3 }
  0x1d   : > { %707 = vst.msk [vmem:[%s3433_s20] sm:$0xff] (!%p2402_p4), %vm702_vm1, %v2852_v3  ;;  %708 = vst.msk [vmem:[%s3433_s20 + $0x8] sm:$0xff] (!%p2402_p4), %vm702_vm1, %v2852_v3 }
  0x1e   : > { %709 = vst.msk [vmem:[%s3434_s21] sm:$0xff] (!%p2402_p4), %vm702_vm1, %v2852_v3  ;;  %710 = vst.msk [vmem:[%s3434_s21 + $0x8] sm:$0xff] (!%p2402_p4), %vm702_vm1, %v2852_v3 }
  0x20   : > { %v697_v1 = vld [vmem:[%s3448_s5] sm:$0xff] (!%p2402_p4)  ;;  %v698_v2 = vld [vmem:[%s3448_s5 + $0x8] sm:$0xff] (!%p2402_p4) }
  0x21   : > { %700 = vst.msk [vmem:[#allocation2] sm:$0xff] %vm699_vm0, %v697_v1  ;;  %701 = vst.msk [vmem:[#allocation2 + $0x8] sm:$0xff] %vm699_vm0, %v698_v2 }
  0x22 PF: > { %s3449_s5 = sld [smem:[#allocation13_spill]]  ;;  %v2853_v5 = vmov 0.0   ;;  %s3450_s26 = sld [smem:[#allocation11_spill]]  ;;  %vm2854_vm2 = vmmov 0   ;;  %vm722_vm3 = vcmask 261120   ;;  %v2740_v12 = vld [vmem:[%s3420_s7] sm:$0xff]  }
  0x23   : > { %2537 = vmatprep.subr.bf16.mxu1 %v2853_v5  ;;  %2529 = vmatprep.subr.bf16.mxu0 %v2853_v5  ;;  %v2741_v13 = vld [vmem:[%s3420_s7 + $0x8] sm:$0xff]   ;;  %v2415_v14 = vld [vmem:[%s3419_s6] ss:$0 sm:$0xff]  ;;  %s3451_s4 = sld [smem:[#allocation12_spill]]  ;;  %vm1020_vm4 = vcmask 64512   ;;  %s2855_s30 = smov 120  }
  0x24   : > { %2541 = vmatprep.mubr.msk.bf16.mxu1 %vm2854_vm2, %v2853_v5  ;;  %2533 = vmatprep.mubr.msk.bf16.mxu0 %vm2854_vm2, %v2853_v5  ;;  %v2419_v32 = vld [vmem:[%s3421_s8] ss:$0 sm:$0xff]  ;;  %vm1138_vm5 = vcmask 1043456   ;;  %s2856_s1 = smov 112   ;;  %s2857_s24 = smov 104   ;;  %vm1924_vm6 = vcmask 130048  }
  0x25   : > { %s3439_s2 = smov 8   ;;  %s2859_s25 = smov 16   ;;  %vm1927_vm7 = vcmask 195584   ;;  %vm2155_vm8 = vcmask 523264   ;;  %vm2262_vm13 = vcmask 7168  }
  0x26   : > { %s2860_s23 = smov 24   ;;  %p774_p5 = scmp.eq.s32.totalorder %s2842_s27, 2 }
  0x27   : > { %s3453_s22 = sadd.s32 4294967295, %s2850_s28  }
  0x28   : > { %v2736_v4 = vld [vmem:[%s3449_s5] sm:$0xff]   ;;  %v2737_v6 = vld [vmem:[%s3449_s5 + $0x8] sm:$0xff]   ;;  %p3375_p6 = scmp.eq.s32.totalorder %s3453_s22, 2 }
  0x29   : > { %2538 = vmatpush3.bf16.msra.mxu1 %v2736_v4  ;;  %v2738_v7 = vld [vmem:[%s3450_s26] sm:$0xff]   ;;  %v3033_v9 = vld [vmem:[#allocation2 + $0x8] sm:$0xff] }
  0x2a   : > { %2539 = vmatprep.subr.bf16.mxu1 %v2853_v5  ;;  %v3031_v8 = vld [vmem:[#allocation2] sm:$0xff]  ;;  %2530 = vmatpush3.bf16.msra.mxu0 %v2738_v7  ;;  %v2739_v10 = vld [vmem:[%s3450_s26 + $0x8] sm:$0xff]  }
  0x2b   : > { %v806_v11 = vpack.c.bf16 %v3033_v9, %v3031_v8  ;;  %2531 = vmatprep.subr.bf16.mxu0 %v2853_v5  ;;  %v2411_v19 = vld [vmem:[%s3451_s4] ss:$0 sm:$0xff]  ;;  %s3452_s4 = sld [smem:[#allocation9_spill]] }
  0x2d   : > { %2540 = vmatpush3.bf16.msra.mxu1 %v2737_v6 }
  0x2e   : > { %2553 = vmatprep.subr.bf16.mxu1 %v2853_v5  ;;  %2532 = vmatpush3.bf16.msra.mxu0 %v2739_v10 }
  0x2f   : > { %2545 = vmatprep.subr.bf16.mxu0 %v2853_v5 }
  0x30   : > { %2542 = vmatmul.mubr.msk.bf16.vlgmr.msra.gmra.mrb[0].mxu1 %vm722_vm3, %v806_v11 }
  0x31   : > { %2555 = vmatprep.mubr.msk.bf16.mxu1 %vm2854_vm2, %v2853_v5  ;;  %2534 = vmatmul.mubr.msk.bf16.vlgmr.msra.gmra.mrb[0].mxu0 %vm722_vm3, %v806_v11 }
  0x32   : > { %2546 = vmatpush3.bf16.msra.mxu0 %v2740_v12  ;;  %2549 = vmatprep.mubr.msk.bf16.mxu0 %vm2854_vm2, %v2853_v5 }
  0x33   : > { %2547 = vmatprep.subr.bf16.mxu0 %v2853_v5 }
  0x36   : > { %2548 = vmatpush3.bf16.msra.mxu0 %v2741_v13 }
  0x37   : > { %2559 = vmatprep.subr.bf16.mxu0 %v2853_v5 }
  0x39   : > { %2550 = vmatmul.mubr.msk.bf16.vlgmr.msra.gmra.mrb[4].mxu0 %vm722_vm3, %v806_v11 }
  0x3a   : > { %2561 = vmatprep.mubr.msk.bf16.mxu0 %vm2854_vm2, %v2853_v5 }
 0x103   : > { %v931_v15 = vpop.f32.mrb[0].mxu1 }
 0x104   : > { %v932_v16 = vadd.f32 %v2415_v14, %v931_v15  ;;  %v2543_v17 = vpop.f32.mrb[1].mxu1  ;;  %v867_v20 = vpop.f32.mrb[0].mxu0 }
 0x105   : > { %v934_v18 = vpop.f32.mrb[2].mxu1  ;;  %v2535_v24 = vpop.f32.mrb[1].mxu0  ;;  %v868_v27 = vadd.f32 %v2411_v19, %v867_v20 }
 0x106   : > { %v3068_v21 = vpack.c.bf16 %v932_v16, %v932_v16  ;;  %v935_v22 = vadd.f32 %v2415_v14, %v934_v18  ;;  %v2544_v23 = vpop.f32.mrb[3].mxu1  ;;  %v870_v25 = vpop.f32.mrb[2].mxu0 }
 0x107   : > { %v871_v29 = vadd.f32 %v2411_v19, %v870_v25  ;;  %v2536_v30 = vpop.f32.mrb[3].mxu0  ;;  %v3082_v33 = vpack.c.bf16 %v868_v27, %v868_v27 }
 0x108   : > { %v3070_v26 = vpack.c.bf16 %v935_v22, %v935_v22  ;;  %1234 = vrot.lane.b32.xlu1 %v3068_v21, %s2855_s30  ;;  %v1025_v28 = vsel %vm1020_vm4, %v3068_v21, 0 }
 0x109   : > { %2554 = vmatpush3.bf16.xpose.msra.mxu1 %v1025_v28  ;;  %v3084_v34 = vpack.c.bf16 %v871_v29, %v871_v29 }
 0x10a   : > { %v1071_v31 = vsel %vm1020_vm4, %v3070_v26, 0  ;;  %2565 = vmatprep.subr.bf16.mxu1 %v2853_v5 }
 0x10b   : > { %2560 = vmatpush3.bf16.xpose.msra.mxu0 %v1071_v31 }
 0x10c   : > { %1284 = vrot.lane.b32.xlu1 %v3070_v26, %s2855_s30  ;;  %2571 = vmatprep.subr.bf16.mxu0 %v2853_v5  ;;  %v995_v35 = vpop.f32.mrb[4].mxu0 }
 0x10d   : > { %v996_v36 = vadd.f32 %v2419_v32, %v995_v35  ;;  %v2551_v37 = vpop.f32.mrb[5].mxu0 }
 0x10e   : > { %v998_v38 = vpop.f32.mrb[6].mxu0 }
 0x10f   : > { %v3093_v39 = vpack.c.bf16 %v996_v36, %v996_v36  ;;  %v999_v40 = vadd.f32 %v2419_v32, %v998_v38  ;;  %v2552_v41 = vpop.f32.mrb[7].mxu0 }
 0x110   : > { %2556 = vmatmul.mubr.msk.bf16.vlgmr.msra.gmra.mrb[4].mxu1 %vm1020_vm4, %v3082_v33  ;;  %1282 = vrot.lane.b32.xlu1 %v3084_v34, %s2855_s30 }
 0x111   : > { %2567 = vmatprep.mubr.msk.bf16.mxu1 %vm2854_vm2, %v2853_v5  ;;  %v3103_v42 = vpack.c.bf16 %v999_v40, %v999_v40  ;;  %v1140_v43 = vsel %vm1138_vm5, %v3093_v39, 0 }
 0x112   : > { %2562 = vmatmul.mubr.msk.bf16.vlgmr.msra.gmra.mrb[8].mxu0 %vm1020_vm4, %v3084_v34  ;;  %2566 = vmatpush3.bf16.msra.mxu1 %v1140_v43 }
 0x113   : > { %2573 = vmatprep.mubr.msk.bf16.mxu0 %vm2854_vm2, %v2853_v5  ;;  %v1186_v44 = vsel %vm1138_vm5, %v3103_v42, 0  ;;  %2577 = vmatprep.subr.bf16.mxu1 %v2853_v5 }
 0x114   : > { %1354 = vrot.lane.b32.xlu1 %v3093_v39, %s2855_s30  ;;  %2572 = vmatpush3.bf16.msra.mxu0 %v1186_v44 }
 0x115   : > { %2583 = vmatprep.subr.bf16.mxu0 %v2853_v5 }
 0x17a   : > { %v1235_v62 = vpop.permute.xlu1 %1234 }
 0x17b   : > { %v1240_v3 = vsel %vm1020_vm4, %v1235_v62, 0 }
 0x17e   : > { %v1285_v0 = vpop.permute.xlu1 %1284 }
 0x17f   : > { %v1290_v10 = vsel %vm1020_vm4, %v1285_v0, 0 }
 0x182   : > { %v1283_v6 = vpop.permute.xlu1 %1282 }
 0x186   : > { %v1355_v11 = vpop.permute.xlu1 %1354 }
 0x187   : > { %v1360_v13 = vsel %vm1138_vm5, %v1355_v11, 0 }
 0x1e3   : > { %v1061_v45 = vpop.f32.mrb[4].mxu1 }
 0x1e4   : > { %v1113_v46 = vmul.f32 0.35355338, %v1061_v45  ;;  %v2557_v47 = vpop.f32.mrb[5].mxu1 }
 0x1e5   : > { %v1064_v48 = vpop.f32.mrb[6].mxu1  ;;  %v1107_v49 = vpop.f32.mrb[8].mxu0 }
 0x1e6   : > { %v1114_v50 = vmul.f32 0.35355338, %v1107_v49  ;;  %v2558_v51 = vpop.f32.mrb[7].mxu1  ;;  %v2563_v52 = vpop.f32.mrb[9].mxu0  ;;  %v1115_v53 = vsel %vm1020_vm4, %v1113_v46, -inf }
 0x1e7   : > { %1116 = vmax.xlane.f32.xlu0 %v1115_v53  ;;  %v1110_v54 = vpop.f32.mrb[10].mxu0 }
 0x1e8   : > { %v2564_v55 = vpop.f32.mrb[11].mxu0  ;;  %v1118_v56 = vsel %vm1020_vm4, %v1114_v50, -inf }
 0x1eb   : > { %1119 = vmax.xlane.f32.xlu0 %v1118_v56 }
 0x201   : > { %1232 = vrot.lane.b32.xlu0 %v3082_v33, %s2855_s30 }
 0x274   : > { %v1117_v57 = vpop.xlane.xlu0 %1116 }
 0x275   : > { %v1121_v58 = vsub.f32 %v1113_v46, %v1117_v57 }
 0x277   : > { %v1123_v59 = vmul.f32 1.442695, %v1121_v58 }
 0x278   : > { %v1120_v60 = vpop.xlane.xlu0 %1119 }
 0x279   : > { %2750 = vpow2.f32 %v1123_v59  ;;  %v1122_v61 = vsub.f32 %v1114_v50, %v1120_v60 }
 0x27b   : > { %v1125_v63 = vmul.f32 1.442695, %v1122_v61 }
 0x27c   : > { %v1233_v12 = vpop.permute.xlu0 %1232 }
 0x27d   : > { %2752 = vpow2.f32 %v1125_v63 }
 0x283   : > { %v3115_v1 = vpop.eup %2750 }
 0x284   : > { %v1133_v2 = vpack.c.bf16 %v3115_v1, %v3115_v1 }
 0x286   : > { %2568 = vmatmul.mubr.msk.bf16.vlgmr.msra.gmra.mrb[8].mxu1 %vm1020_vm4, %v1133_v2 }
 0x287   : > { %v3121_v4 = vpop.eup %2752  ;;  %2578 = vmatpush3.bf16.xpose.msra.mxu1 %v1240_v3  ;;  %2579 = vmatprep.mubr.msk.bf16.mxu1 %vm2854_vm2, %v2853_v5 }
 0x288   : > { %v1134_v7 = vpack.c.bf16 %v3121_v4, %v3121_v4  ;;  %2589 = vmatprep.subr.bf16.mxu1 %v2853_v5 }
 0x28a   : > { %2574 = vmatmul.mubr.msk.bf16.vlgmr.msra.gmra.mrb[12].mxu0 %vm1020_vm4, %v1134_v7 }
 0x28b   : > { %2584 = vmatpush3.bf16.xpose.msra.mxu0 %v1290_v10  ;;  %2585 = vmatprep.mubr.msk.bf16.mxu0 %vm2854_vm2, %v2853_v5 }
 0x28c   : > { %2595 = vmatprep.subr.bf16.mxu0 %v2853_v5 }
 0x28e   : > { %2580 = vmatmul.mubr.msk.bf16.vlgmr.msra.gmra.mrb[12].mxu1 %vm1020_vm4, %v1233_v12 }
 0x28f   : > { %2590 = vmatpush3.bf16.msra.mxu1 %v1360_v13  ;;  %2591 = vmatprep.mubr.msk.bf16.mxu1 %vm2854_vm2, %v2853_v5 }
 0x290   : > { %2601 = vmatprep.subr.bf16.mxu1 %v2853_v5 }
 0x292   : > { %2586 = vmatmul.mubr.msk.bf16.vlgmr.msra.gmra.mrb[16].mxu0 %vm1020_vm4, %v1283_v6 }
 0x293   : > { %2597 = vmatprep.mubr.msk.bf16.mxu0 %vm2854_vm2, %v2853_v5 }
 0x359   : > { %v3141_v14 = vpop.f32.mrb[8].mxu1 }
 0x35a   : > { %v2569_v15 = vpop.f32.mrb[9].mxu1 }
 0x35b   : > { %v1179_v16 = vpop.f32.mrb[10].mxu1 }
 0x35c   : > { %v2570_v17 = vpop.f32.mrb[11].mxu1 }
 0x35d   : > { %v3143_v18 = vpop.f32.mrb[12].mxu0 }
 0x35e   : > { %v2575_v19 = vpop.f32.mrb[13].mxu0 }
 0x35f   : > { %v1225_v20 = vpop.f32.mrb[14].mxu0 }
 0x360   : > { %v2576_v22 = vpop.f32.mrb[15].mxu0 }
 0x361   : > { %v1276_v23 = vpop.f32.mrb[12].mxu1 }
 0x362   : > { %v1332_v24 = vmul.f32 0.35355338, %v1276_v23  ;;  %v2581_v25 = vpop.f32.mrb[13].mxu1 }
 0x363   : > { %v1279_v27 = vpop.f32.mrb[14].mxu1 }
 0x364   : > { %v2582_v28 = vpop.f32.mrb[15].mxu1  ;;  %v1334_v29 = vsel %vm1020_vm4, %v1332_v24, -inf }
 0x365   : > { %1335 = vmax.xlane.f32.xlu1 %v1334_v29  ;;  %v1326_v30 = vpop.f32.mrb[16].mxu0 }
 0x366   : > { %v1333_v31 = vmul.f32 0.35355338, %v1326_v30  ;;  %v2587_v32 = vpop.f32.mrb[17].mxu0 }
 0x367   : > { %v1329_v35 = vpop.f32.mrb[18].mxu0 }
 0x368   : > { %v2588_v36 = vpop.f32.mrb[19].mxu0  ;;  %v1337_v37 = vsel %vm1020_vm4, %v1333_v31, -inf }
 0x369   : > { %1338 = vmax.xlane.f32.xlu0 %v1337_v37 }
 0x376   : > { %1456 = vrot.lane.b32.xlu1 %v3068_v21, %s2856_s1 }
 0x37a   : > { %1506 = vrot.lane.b32.xlu1 %v3070_v26, %s2856_s1 }
 0x37e   : > { %1454 = vrot.lane.b32.xlu1 %v3082_v33, %s2856_s1 }
 0x37f   : > { %1402 = vrot.lane.b32.xlu0 %v3103_v42, %s2855_s30 }
 0x382   : > { %1504 = vrot.lane.b32.xlu1 %v3084_v34, %s2856_s1 }
 0x383   : > { %1576 = vrot.lane.b32.xlu0 %v3093_v39, %s2856_s1 }
 0x386   : > { %1624 = vrot.lane.b32.xlu1 %v3103_v42, %s2856_s1 }
 0x3f2   : > { %v1336_v38 = vpop.xlane.xlu1 %1335 }
 0x3f3   : > { %v1340_v40 = vsub.f32 %v1332_v24, %v1336_v38 }
 0x3f5   : > { %v1342_v41 = vmul.f32 1.442695, %v1340_v40 }
 0x3f6   : > { %v1457_v43 = vpop.permute.xlu1 %1456  ;;  %v1339_v44 = vpop.xlane.xlu0 %1338 }
 0x3f7   : > { %2754 = vpow2.f32 %v1342_v41  ;;  %v1341_v45 = vsub.f32 %v1333_v31, %v1339_v44  ;;  %v1462_v53 = vsel %vm1020_vm4, %v1457_v43, 0 }
 0x3f9   : > { %v1344_v46 = vmul.f32 1.442695, %v1341_v45 }
 0x3fa   : > { %v1403_v47 = vpop.permute.xlu0 %1402  ;;  %v1507_v48 = vpop.permute.xlu1 %1506 }
 0x3fb   : > { %2756 = vpow2.f32 %v1344_v46  ;;  %v1408_v49 = vsel %vm1138_vm5, %v1403_v47, 0  ;;  %v1512_v57 = vsel %vm1020_vm4, %v1507_v48, 0 }
 0x3fc   : > { %2596 = vmatpush3.bf16.msra.mxu0 %v1408_v49 }
 0x3fd   : > { %2607 = vmatprep.subr.bf16.mxu0 %v2853_v5 }
 0x3fe   : > { %v1455_v51 = vpop.permute.xlu1 %1454  ;;  %v1577_v58 = vpop.permute.xlu0 %1576 }
 0x3ff   : > { %v1582_v59 = vsel %vm1138_vm5, %v1577_v58, 0 }
 0x401   : > { %v3157_v50 = vpop.eup %2754 }
 0x402   : > { %v1352_v52 = vpack.c.bf16 %v3157_v50, %v3157_v50  ;;  %v1505_v56 = vpop.permute.xlu1 %1504 }
 0x404   : > { %2592 = vmatmul.mubr.msk.bf16.vlgmr.msra.gmra.mrb[16].mxu1 %vm1020_vm4, %v1352_v52 }
 0x405   : > { %v3163_v54 = vpop.eup %2756  ;;  %2602 = vmatpush3.bf16.xpose.msra.mxu1 %v1462_v53  ;;  %2603 = vmatprep.mubr.msk.bf16.mxu1 %vm2854_vm2, %v2853_v5 }
 0x406   : > { %v1353_v55 = vpack.c.bf16 %v3163_v54, %v3163_v54  ;;  %2613 = vmatprep.subr.bf16.mxu1 %v2853_v5  ;;  %v1625_v60 = vpop.permute.xlu1 %1624 }
 0x407   : > { %v1630_v61 = vsel %vm1138_vm5, %v1625_v60, 0 }
 0x408   : > { %2598 = vmatmul.mubr.msk.bf16.vlgmr.msra.gmra.mrb[20].mxu0 %vm1020_vm4, %v1353_v55 }
 0x409   : > { %2608 = vmatpush3.bf16.xpose.msra.mxu0 %v1512_v57  ;;  %2609 = vmatprep.mubr.msk.bf16.mxu0 %vm2854_vm2, %v2853_v5 }
 0x40a   : > { %2619 = vmatprep.subr.bf16.mxu0 %v2853_v5 }
 0x40c   : > { %2604 = vmatmul.mubr.msk.bf16.vlgmr.msra.gmra.mrb[20].mxu1 %vm1020_vm4, %v1455_v51 }
 0x40d   : > { %2614 = vmatpush3.bf16.msra.mxu1 %v1582_v59  ;;  %2615 = vmatprep.mubr.msk.bf16.mxu1 %vm2854_vm2, %v2853_v5 }
 0x40e   : > { %2625 = vmatprep.subr.bf16.mxu1 %v2853_v5 }
 0x410   : > { %2610 = vmatmul.mubr.msk.bf16.vlgmr.msra.gmra.mrb[24].mxu0 %vm1020_vm4, %v1505_v56 }
 0x411   : > { %2620 = vmatpush3.bf16.msra.mxu0 %v1630_v61  ;;  %2621 = vmatprep.mubr.msk.bf16.mxu0 %vm2854_vm2, %v2853_v5 }
 0x412   : > { %2631 = vmatprep.subr.bf16.mxu0 %v2853_v5 }
 0x4d7   : > { %v3185_v62 = vpop.f32.mrb[16].mxu1 }
 0x4d8   : > { %v2593_v63 = vpop.f32.mrb[17].mxu1 }
 0x4d9   : > { %v1399_v0 = vpop.f32.mrb[18].mxu1 }
 0x4da   : > { %v2594_v2 = vpop.f32.mrb[19].mxu1 }
 0x4db   : > { %v3187_v3 = vpop.f32.mrb[20].mxu0 }
 0x4dc   : > { %v2599_v6 = vpop.f32.mrb[21].mxu0 }
 0x4dd   : > { %v1447_v7 = vpop.f32.mrb[22].mxu0  ;;  %v1346_v6 = vsel %vm1020_vm4, %v3157_v50, 0.0 }
 0x4de   : > { %v2600_v10 = vpop.f32.mrb[23].mxu0 }
 0x4df   : > { %v1498_v11 = vpop.f32.mrb[20].mxu1  ;;  %v1349_v10 = vsel %vm1020_vm4, %v3163_v54, 0.0 }
 0x4e0   : > { %v1554_v12 = vmul.f32 0.35355338, %v1498_v11  ;;  %v2605_v13 = vpop.f32.mrb[21].mxu1 }
 0x4e1   : > { %v1501_v15 = vpop.f32.mrb[22].mxu1 }
 0x4e2   : > { %v2606_v16 = vpop.f32.mrb[23].mxu1  ;;  %v1556_v17 = vsel %vm1020_vm4, %v1554_v12, -inf }
 0x4e3   : > { %1557 = vmax.xlane.f32.xlu1 %v1556_v17  ;;  %v1548_v19 = vpop.f32.mrb[24].mxu0 }
 0x4e4   : > { %v1555_v20 = vmul.f32 0.35355338, %v1548_v19  ;;  %v2611_v22 = vpop.f32.mrb[25].mxu0 }
 0x4e5   : > { %v1551_v23 = vpop.f32.mrb[26].mxu0 }
 0x4e6   : > { %v2612_v24 = vpop.f32.mrb[27].mxu0  ;;  %v1559_v25 = vsel %vm1020_vm4, %v1555_v20, -inf }
 0x4e7   : > { %1560 = vmax.xlane.f32.xlu0 %v1559_v25  ;;  %v1127_v25 = vsel %vm1020_vm4, %v3115_v1, 0.0 }
 0x4f4   : > { %1678 = vrot.lane.b32.xlu1 %v3068_v21, %s2857_s24 }
 0x4f8   : > { %1676 = vrot.lane.b32.xlu1 %v3082_v33, %s2857_s24 }
 0x4fd   : > { %1728 = vrot.lane.b32.xlu0 %v3070_v26, %s2857_s24 }
 0x501   : > { %1726 = vrot.lane.b32.xlu0 %v3084_v34, %s2857_s24 }
 0x570   : > { %v1558_v27 = vpop.xlane.xlu1 %1557 }
 0x571   : > { %v1562_v28 = vsub.f32 %v1554_v12, %v1558_v27 }
 0x573   : > { %v1564_v29 = vmul.f32 1.442695, %v1562_v28 }
 0x574   : > { %v1561_v30 = vpop.xlane.xlu0 %1560  ;;  %v1679_v36 = vpop.permute.xlu1 %1678 }
 0x575   : > { %2758 = vpow2.f32 %v1564_v29  ;;  %v1563_v31 = vsub.f32 %v1555_v20, %v1561_v30  ;;  %v1684_v37 = vsel %vm1020_vm4, %v1679_v36, 0  ;;  %v1130_v29 = vsel %vm1020_vm4, %v3121_v4, 0.0 }
 0x577   : > { %v1566_v32 = vmul.f32 1.442695, %v1563_v31 }
 0x578   : > { %v1729_v26 = vpop.permute.xlu0 %1728  ;;  %v1677_v40 = vpop.permute.xlu1 %1676 }
 0x579   : > { %2760 = vpow2.f32 %v1566_v32  ;;  %v1734_v38 = vsel %vm1020_vm4, %v1729_v26, 0 }
 0x57c   : > { %v1727_v41 = vpop.permute.xlu0 %1726 }
 0x57f   : > { %v2759_v35 = vpop.eup %2758 }
 0x580   : > { %v1574_v21 = vpack.c.bf16 %v2759_v35, %v2759_v35  ;;  %v1568_v11 = vsel %vm1020_vm4, %v2759_v35, 0.0 }
 0x582   : > { %2616 = vmatmul.mubr.msk.bf16.vlgmr.msra.gmra.mrb[24].mxu1 %vm1020_vm4, %v1574_v21 }
 0x583   : > { %v2761_v33 = vpop.eup %2760  ;;  %2626 = vmatpush3.bf16.xpose.msra.mxu1 %v1684_v37  ;;  %2627 = vmatprep.mubr.msk.bf16.mxu1 %vm2854_vm2, %v2853_v5 }
 0x584   : > { %v1575_v34 = vpack.c.bf16 %v2761_v33, %v2761_v33  ;;  %2637 = vmatprep.subr.bf16.mxu1 %v2853_v5  ;;  %v1571_v7 = vsel %vm1020_vm4, %v2761_v33, 0.0 }
 0x586   : > { %2622 = vmatmul.mubr.msk.bf16.vlgmr.msra.gmra.mrb[28].mxu0 %vm1020_vm4, %v1575_v34 }
 0x587   : > { %2632 = vmatpush3.bf16.xpose.msra.mxu0 %v1734_v38  ;;  %2633 = vmatprep.mubr.msk.bf16.mxu0 %vm2854_vm2, %v2853_v5 }
 0x588   : > { %2643 = vmatprep.subr.bf16.mxu0 %v2853_v5 }
 0x58a   : > { %2628 = vmatmul.mubr.msk.bf16.vlgmr.msra.gmra.mrb[28].mxu1 %vm1020_vm4, %v1677_v40 }
 0x58b   : > { %2639 = vmatprep.mubr.msk.bf16.mxu1 %vm2854_vm2, %v2853_v5 }
 0x58e   : > { %2634 = vmatmul.mubr.msk.bf16.vlgmr.msra.gmra.mrb[32].mxu0 %vm1020_vm4, %v1727_v41  ;;  %v2742_v41 = vld [vmem:[%s3422_s9] sm:$0xff]  }
 0x58f   : > { %2645 = vmatprep.mubr.msk.bf16.mxu0 %vm2854_vm2, %v2853_v5 }
 0x655   : > { %v3215_v43 = vpop.f32.mrb[24].mxu1 }
 0x656   : > { %v2617_v44 = vpop.f32.mrb[25].mxu1 }
 0x657   : > { %v1621_v45 = vpop.f32.mrb[26].mxu1 }
 0x658   : > { %v2618_v46 = vpop.f32.mrb[27].mxu1 }
 0x659   : > { %v3217_v47 = vpop.f32.mrb[28].mxu0 }
 0x65a   : > { %v2623_v48 = vpop.f32.mrb[29].mxu0 }
 0x65b   : > { %v1669_v49 = vpop.f32.mrb[30].mxu0 }
 0x65c   : > { %v2624_v51 = vpop.f32.mrb[31].mxu0 }
 0x65d   : > { %v1720_v52 = vpop.f32.mrb[28].mxu1 }
 0x65e   : > { %v1776_v53 = vmul.f32 0.35355338, %v1720_v52  ;;  %v2629_v55 = vpop.f32.mrb[29].mxu1 }
 0x65f   : > { %v1723_v56 = vpop.f32.mrb[30].mxu1 }
 0x660   : > { %v2630_v57 = vpop.f32.mrb[31].mxu1  ;;  %v1778_v58 = vsel %vm1020_vm4, %v1776_v53, -inf }
 0x661   : > { %1779 = vmax.xlane.f32.xlu1 %v1778_v58  ;;  %v1770_v59 = vpop.f32.mrb[32].mxu0 }
 0x662   : > { %v1777_v60 = vmul.f32 0.35355338, %v1770_v59  ;;  %v2635_v61 = vpop.f32.mrb[33].mxu0 }
 0x663   : > { %v1773_v63 = vpop.f32.mrb[34].mxu0 }
 0x664   : > { %v2636_v0 = vpop.f32.mrb[35].mxu0  ;;  %v1781_v2 = vsel %vm1020_vm4, %v1777_v60, -inf }
 0x665   : > { %1782 = vmax.xlane.f32.xlu0 %v1781_v2 }
 0x672   : > { %1846 = vrot.lane.b32.xlu1 %v3103_v42, %s2857_s24 }
 0x67b   : > { %1798 = vrot.lane.b32.xlu0 %v3093_v39, %s2857_s24  ;;  %s775_s24 = scalar_select %p774_p5, 1, 0 }
 0x696   : > { %1347 = vadd.xlane.f32.xlu1 %v1346_v6 }
 0x69a   : > { %1572 = vadd.xlane.f32.xlu1 %v1571_v7  ;;  %1350 = vadd.xlane.f32.xlu0 %v1349_v10 }
 0x69e   : > { %1569 = vadd.xlane.f32.xlu0 %v1568_v11 }
 0x6ee   : > { %v1780_v12 = vpop.xlane.xlu1 %1779 }
 0x6ef   : > { %v1784_v13 = vsub.f32 %v1776_v53, %v1780_v12 }
 0x6f1   : > { %v1786_v42 = vmul.f32 1.442695, %v1784_v13 }
 0x6f2   : > { %v1847_v15 = vpop.permute.xlu1 %1846  ;;  %v1783_v16 = vpop.xlane.xlu0 %1782 }
 0x6f3   : > { %2762 = vpow2.f32 %v1786_v42  ;;  %v1852_v39 = vsel %vm1138_vm5, %v1847_v15, 0  ;;  %v1785_v50 = vsub.f32 %v1777_v60, %v1783_v16 }
 0x6f4   : > { %2644 = vmatpush3.bf16.msra.mxu0 %v1852_v39 }
 0x6f5   : > { %v1788_v17 = vmul.f32 1.442695, %v1785_v50  ;;  %2657 = vmatprep.subr.bf16.mxu0 %v2853_v5 }
 0x6f6   : > { %v1799_v19 = vpop.permute.xlu0 %1798 }
 0x6f7   : > { %2764 = vpow2.f32 %v1788_v17  ;;  %v1804_v54 = vsel %vm1138_vm5, %v1799_v19, 0 }
 0x6f8   : > { %2638 = vmatpush3.bf16.msra.mxu1 %v1804_v54 }
 0x6f9   : > { %2649 = vmatprep.subr.bf16.mxu1 %v2853_v5 }
 0x6fd   : > { %v2763_v20 = vpop.eup %2762 }
 0x6fe   : > { %v1790_v22 = vsel %vm1020_vm4, %v2763_v20, 0.0  ;;  %v1796_v23 = vpack.c.bf16 %v2763_v20, %v2763_v20 }
 0x6ff   : > { %1791 = vadd.xlane.f32.xlu0 %v1790_v22 }
 0x700   : > { %2640 = vmatmul.mubr.msk.bf16.vlgmr.msra.gmra.mrb[32].mxu1 %vm1020_vm4, %v1796_v23 }
 0x701   : > { %v2765_v24 = vpop.eup %2764  ;;  %2653 = vmatprep.mubr.msk.bf16.mxu1 %vm2854_vm2, %v2853_v5  ;;  %2650 = vmatpush3.bf16.msra.mxu1 %v2742_v41  ;;  %v2745_v41 = vld [vmem:[%s3426_s13 + $0x8] sm:$0xff]  }
 0x702   : > { %v1793_v27 = vsel %vm1020_vm4, %v2765_v24, 0.0  ;;  %v1797_v28 = vpack.c.bf16 %v2765_v24, %v2765_v24  ;;  %2651 = vmatprep.subr.bf16.mxu1 %v2853_v5 }
 0x703   : > { %1128 = vadd.xlane.f32.xlu0 %v1127_v25  ;;  %1794 = vadd.xlane.f32.xlu1 %v1793_v27 }
 0x704   : > { %2646 = vmatmul.mubr.msk.bf16.vlgmr.msra.gmra.mrb[36].mxu0 %vm1020_vm4, %v1797_v28 }
 0x705   : > { %2661 = vmatprep.mubr.msk.bf16.mxu0 %vm2854_vm2, %v2853_v5 }
 0x707   : > { %1131 = vadd.xlane.f32.xlu1 %v1130_v29 }
 0x723   : > { %v1348_v30 = vpop.xlane.xlu1 %1347 }
 0x724   : > { %2766 = vrcp.f32 %v1348_v30 }
 0x727   : > { %v1573_v31 = vpop.xlane.xlu1 %1572  ;;  %v1351_v32 = vpop.xlane.xlu0 %1350 }
 0x728   : > { %2768 = vrcp.f32 %v1351_v32 }
 0x729   : > { %2770 = vrcp.f32 %v1573_v31 }
 0x72b   : > { %v1570_v1 = vpop.xlane.xlu0 %1569 }
 0x72c   : > { %2772 = vrcp.f32 %v1570_v1 }
 0x72e   : > { %v2767_v35 = vpop.eup %2766 }
 0x72f   : > { %v1452_v37 = vmul.f32 %v2767_v35, %v3185_v62 }
 0x732   : > { %v2769_v36 = vpop.eup %2768 }
 0x733   : > { %v2771_v21 = vpop.eup %2770  ;;  %v1453_v33 = vmul.f32 %v2769_v36, %v3187_v3 }
 0x734   : > { %v1675_v38 = vmul.f32 %v2771_v21, %v3217_v47 }
 0x735   : > { %v2719_v34 = vpack.i.bf16 %v1453_v33, %v1452_v37 }
 0x736   : > { %v2773_v26 = vpop.eup %2772 }
 0x737   : > { %v1674_v4 = vmul.f32 %v2773_v26, %v3215_v43  ;;  %2720 = vrot.lane.b32.xlu0 %v2719_v34, %s3439_s2  ;;  %v2743_v43 = vld [vmem:[%s3422_s9 + $0x8] sm:$0xff]  }
 0x738   : > { %2652 = vmatpush3.bf16.msra.mxu1 %v2743_v43 }
 0x739   : > { %v2724_v40 = vpack.i.bf16 %v1675_v38, %v1674_v4  ;;  %2665 = vmatprep.subr.bf16.mxu1 %v2853_v5 }
 0x73b   : > { %2725 = vrot.lane.b32.xlu1 %v2724_v40, %s2859_s25  ;;  %v2744_v40 = vld [vmem:[%s3426_s13] sm:$0xff]   ;;  %s776_s25 = scvt.s32.f32 %s775_s24 }
 0x73c   : > { %2658 = vmatpush3.bf16.msra.mxu0 %v2744_v40  ;;  %v751_v40 = vld [vmem:[#allocation3 + $0x8] sm:$0xff] }
 0x73d   : > { %2659 = vmatprep.subr.bf16.mxu0 %v2853_v5  ;;  %vm759_vm10 = vcmp.lt.f32.partialorder %v751_v40, 1.0 }
 0x740   : > { %2660 = vmatpush3.bf16.msra.mxu0 %v2745_v41 }
 0x78c   : > { %v1792_v62 = vpop.xlane.xlu0 %1791 }
 0x78d   : > { %2774 = vrcp.f32 %v1792_v62  ;;  %v2746_v62 = vld [vmem:[%s3428_s15] sm:$0xff]  }
 0x790   : > { %v1795_v3 = vpop.xlane.xlu1 %1794  ;;  %v1129_v59 = vpop.xlane.xlu0 %1128 }
 0x791   : > { %2776 = vrcp.f32 %v1795_v3  ;;  %v2747_v3 = vld [vmem:[%s3428_s15 + $0x8] sm:$0xff]  }
 0x792   : > { %2778 = vrcp.f32 %v1129_v59 }
 0x794   : > { %v1132_v60 = vpop.xlane.xlu1 %1131 }
 0x795   : > { %2780 = vrcp.f32 %v1132_v60 }
 0x797   : > { %v2775_v47 = vpop.eup %2774 }
 0x79b   : > { %v2777_v49 = vpop.eup %2776 }
 0x79c   : > { %v2779_v63 = vpop.eup %2778 }
 0x79d   : > { %v1230_v12 = vmul.f32 %v2779_v63, %v3141_v14  ;;  %v2445_v14 = vld [vmem:[%s3423_s10] ss:$0 sm:$0xff]  ;;  %v2748_v63 = vld [vmem:[%s3428_s15 + $0x10] sm:$0xff]  }
 0x79f   : > { %v2781_v2 = vpop.eup %2780 }
 0x7a0   : > { %v1231_v13 = vmul.f32 %v2781_v2, %v3143_v18  ;;  %v2403_v2 = vld [vmem:[%s3452_s4] ss:$0 sm:$0xff]  ;;  %s2862_s4 = smov [#allocation5]  }
 0x7a1   : > { %s2290_s30 = sshll.u32 %s2862_s4, 4  ;;  %s2291_s30 = int_to_ptr.vmem [resolvable:$true] %s2290_s30 }
 0x7a2   : > { %s2798_s1 = scalar_lea.vmem %s2291_s30, 256  ;;  %p2805_p10 = scmp.lt.s32.totalorder %s2291_s30, %s2291_s30 }
 0x7a3   : > { %p2799_p7 = scmp.ne.s32.totalorder %s2291_s30, %s2798_s1  ;;  %p2806_p11 = scmp.lt.s32.totalorder %s2798_s1, %s2798_s1 }
 0x7a5   : > { %p2800_p8 = pnand %p2799_p7, %p3375_p6  ;;  %p2807_p12 = por %p2806_p11, %p2805_p10 }
 0x7a7   : > { %p2801_p9 = pneg %p2800_p8 }
 0x7a9   : > { %v2721_v61 = vpop.permute.xlu0 %2720  ;;  %p2808_p13 = pnand %p2807_p12, %p2801_p9 }
 0x7aa   : > { %v2723_v6 = vunpack.i.h.bf16 %v2721_v61  ;;  %v2722_v7 = vunpack.i.l.bf16 %v2721_v61 }
 0x7ac   : > { %v1923_v15 = vsel %vm1020_vm4, %v1231_v13, %v2723_v6  ;;  %v1922_v16 = vsel %vm1020_vm4, %v1230_v12, %v2722_v7  ;;  %v721_v6 = vmul.f32 %v2403_v2, %v3033_v9  ;;  %v720_v7 = vmul.f32 %v2403_v2, %v3031_v8  ;;  %v2451_v12 = vld [vmem:[%s3427_s14] ss:$0 sm:$0xff] }
 0x7ad   : > { %v2726_v0 = vpop.permute.xlu1 %2725 }
 0x7ae   : > { %v2728_v10 = vunpack.i.h.bf16 %v2726_v0  ;;  %v2727_v11 = vunpack.i.l.bf16 %v2726_v0  ;;  %v2749_v0 = vld [vmem:[%s3428_s15 + $0x18] sm:$0xff]  }
 0x7b0   : > { %v1925_v17 = vsel %vm1924_vm6, %v1922_v16, %v2727_v11  ;;  %v1926_v19 = vsel %vm1924_vm6, %v1923_v15, %v2728_v10  ;;  %v726_v10 = vsel %vm722_vm3, %v721_v6, 0.0  ;;  %v723_v11 = vsel %vm722_vm3, %v720_v7, 0.0 }
 0x7d3   : > { %v1840_v44 = vpop.f32.mrb[32].mxu1 }
 0x7d4   : > { %v2641_v45 = vpop.f32.mrb[33].mxu1  ;;  %v1896_v52 = vmul.f32 %v2775_v47, %v1840_v44 }
 0x7d5   : > { %v1843_v46 = vpop.f32.mrb[34].mxu1 }
 0x7d6   : > { %v2642_v48 = vpop.f32.mrb[35].mxu1 }
 0x7d7   : > { %v1888_v51 = vpop.f32.mrb[36].mxu0 }
 0x7d8   : > { %v1897_v53 = vmul.f32 %v2777_v49, %v1888_v51  ;;  %v2647_v55 = vpop.f32.mrb[37].mxu0 }
 0x7d9   : > { %v1891_v56 = vpop.f32.mrb[38].mxu0 }
 0x7da   : > { %v2729_v57 = vpack.i.bf16 %v1897_v53, %v1896_v52  ;;  %v2648_v58 = vpop.f32.mrb[39].mxu0  ;;  %v2449_v52 = vld [vmem:[%s3424_s11] ss:$0 sm:$0xff] }
 0x7dc   : > { %2730 = vrot.lane.b32.xlu1 %v2729_v57, %s2860_s23  ;;  %v2450_v57 = vld [vmem:[%s3425_s12] ss:$0 sm:$0xff] }
 0x84e   : > { %v2731_v42 = vpop.permute.xlu1 %2730 }
 0x84f   : > { %v2733_v39 = vunpack.i.h.bf16 %v2731_v42  ;;  %v2732_v50 = vunpack.i.l.bf16 %v2731_v42 }
 0x851   : > { %v1929_v54 = vsel %vm1927_vm7, %v1926_v19, %v2733_v39  ;;  %v1928_v20 = vsel %vm1927_vm7, %v1925_v17, %v2732_v50  ;;  %v2404_v19 = vld [vmem:[#allocation4] ss:$0 sm:$0xff] }
 0x852   : > { %v1930_v22 = vpack.c.bf16 %v1929_v54, %v1928_v20 }
 0x854   : > { %2654 = vmatmul.mubr.msk.bf16.vlgmr.msra.gmra.mrb[36].mxu1 %vm722_vm3, %v1930_v22 }
 0x855   : > { %2673 = vmatprep.mubr.msk.bf16.mxu1 %vm2854_vm2, %v2853_v5  ;;  %2666 = vmatpush3.bf16.msra.mxu1 %v2746_v62  ;;  %v2408_v62 = vsel %vm759_vm10, 1.0, %v2853_v5 }
 0x856   : > { %2667 = vmatprep.subr.bf16.mxu1 %v2853_v5 }
 0x859   : > { %2668 = vmatpush3.bf16.msra.mxu1 %v2747_v3 }
 0x85a   : > { %2669 = vmatprep.subr.bf16.mxu1 %v2853_v5 }
 0x85d   : > { %2670 = vmatpush3.bf16.msra.mxu1 %v2748_v63 }
 0x85e   : > { %2671 = vmatprep.subr.bf16.mxu1 %v2853_v5 }
 0x861   : > { %2672 = vmatpush3.bf16.msra.mxu1 %v2749_v0 }
 0x927   : > { %v1991_v18 = vpop.f32.mrb[36].mxu1 }
 0x928   : > { %v1992_v23 = vadd.f32 %v2445_v14, %v1991_v18  ;;  %v2655_v24 = vpop.f32.mrb[37].mxu1 }
 0x929   : > { %v1994_v25 = vpop.f32.mrb[38].mxu1 }
 0x92a   : > { %v1995_v27 = vadd.f32 %v2445_v14, %v1994_v25  ;;  %v2656_v28 = vpop.f32.mrb[39].mxu1  ;;  %v1998_v29 = vadd.f32 %v1992_v23, %v3031_v8 }
 0x92c   : > { %v2002_v30 = vsel %vm722_vm3, %v1998_v29, 0.0  ;;  %v1999_v31 = vadd.f32 %v1995_v27, %v3033_v9  ;;  %v2455_v27 = vld [vmem:[%s3429_s16] ss:$0 sm:$0xff] }
 0x92d   : > { %2003 = vadd.xlane.f32.xlu0 %v2002_v30 }
 0x92e   : > { %v2005_v32 = vsel %vm722_vm3, %v1999_v31, 0.0 }
 0x92f   : > { %2006 = vadd.xlane.f32.xlu1 %v2005_v32 }
 0x933   : > { %724 = vadd.xlane.f32.xlu1 %v723_v11 }
 0x9ba   : > { %v2004_v1 = vpop.xlane.xlu0 %2003 }
 0x9bb   : > { %v2009_v35 = vmul.f32 0.03125, %v2004_v1 }
 0x9bc   : > { %v2007_v36 = vpop.xlane.xlu1 %2006 }
 0x9bd   : > { %v2011_v21 = vsub.f32 %v1998_v29, %v2009_v35  ;;  %v2010_v37 = vmul.f32 0.03125, %v2007_v36 }
 0x9bf   : > { %v2012_v33 = vsub.f32 %v1999_v31, %v2010_v37  ;;  %v2013_v26 = vmul.f32 %v2011_v21, %v2011_v21 }
 0x9c0   : > { %v725_v20 = vpop.xlane.xlu1 %724 }
 0x9c1   : > { %v2015_v34 = vsel %vm722_vm3, %v2013_v26, 0.0  ;;  %v2014_v4 = vmul.f32 %v2012_v33, %v2012_v33  ;;  %v736_v14 = vadd.f32 %v2404_v19, %v725_v20 }
 0x9c2   : > { %2016 = vadd.xlane.f32.xlu0 %v2015_v34 }
 0x9c3   : > { %v2018_v38 = vsel %vm722_vm3, %v2014_v4, 0.0  ;;  %v2405_v23 = vmul.f32 -1.442695, %v736_v14 }
 0x9c6   : > { %2019 = vadd.xlane.f32.xlu0 %v2018_v38  ;;  %v750_v38 = vld [vmem:[#allocation3] sm:$0xff] }
 0x9c7   : > { %vm758_vm9 = vcmp.lt.f32.partialorder %v750_v38, 1.0 }
 0x9c8   : > { %v2407_v41 = vsel %vm758_vm9, 1.0, %v2853_v5 }
 0x9ca   : > { %727 = vadd.xlane.f32.xlu0 %v726_v10  ;;  %v752_v10 = vld [vmem:[%s3433_s20] sm:$0xff] }
 0xa4f   : > { %v2017_v43 = vpop.xlane.xlu0 %2016 }
 0xa50   : > { %v2021_v44 = vmul.f32 0.03125, %v2017_v43 }
 0xa52   : > { %v2023_v45 = vadd.f32 1e-05, %v2021_v44 }
 0xa53   : > { %v2020_v46 = vpop.xlane.xlu0 %2019 }
 0xa54   : > { %2782 = vrsqrt.f32 %v2023_v45  ;;  %v2022_v47 = vmul.f32 0.03125, %v2020_v46 }
 0xa56   : > { %v2024_v48 = vadd.f32 1e-05, %v2022_v47  ;;  %v777_v47 = vstv %s776_s25 }
 0xa57   : > { %v728_v54 = vpop.xlane.xlu0 %727 }
 0xa58   : > { %2784 = vrsqrt.f32 %v2024_v48  ;;  %v737_v22 = vadd.f32 %v2404_v19, %v728_v54  ;;  %v755_v54 = vld [vmem:[%s3434_s21 + $0x8] sm:$0xff] }
 0xa5a   : > { %v2406_v18 = vmul.f32 -1.442695, %v737_v22 }
 0xa5c   : > { %2786 = vpow2.f32 %v2406_v18 }
 0xa5d   : > { %2788 = vpow2.f32 %v2405_v23 }
 0xa5e   : > { %v2783_v49 = vpop.eup %2782 }
 0xa5f   : > { %v2027_v51 = vmul.f32 %v2783_v49, %v2011_v21 }
 0xa61   : > { %v2035_v55 = vmul.f32 %v2449_v52, %v2027_v51 }
 0xa62   : > { %v2785_v53 = vpop.eup %2784 }
 0xa63   : > { %v2028_v56 = vmul.f32 %v2785_v53, %v2012_v33  ;;  %v2043_v59 = vadd.f32 %v2450_v57, %v2035_v55 }
 0xa65   : > { %v2036_v58 = vmul.f32 %v2449_v52, %v2028_v56 }
 0xa66   : > { %v2787_v24 = vpop.eup %2786 }
 0xa67   : > { %v2044_v60 = vadd.f32 %v2450_v57, %v2036_v58  ;;  %v2789_v25 = vpop.eup %2788  ;;  %v745_v28 = vadd.f32 1.0, %v2787_v24  ;;  %v754_v57 = vld [vmem:[%s3434_s21] sm:$0xff] }
 0xa68   : > { %v744_v30 = vadd.f32 1.0, %v2789_v25 }
 0xa69   : > { %v2045_v61 = vpack.c.bf16 %v2044_v60, %v2043_v59  ;;  %2790 = vrcp.f32 %v745_v28 }
 0xa6a   : > { %2792 = vrcp.f32 %v744_v30 }
 0xa6b   : > { %2662 = vmatmul.mubr.msk.bf16.vlgmr.msra.gmra.mrb[40].mxu0 %vm722_vm3, %v2045_v61 }
 0xa73   : > { %v2791_v34 = vpop.eup %2790 }
 0xa74   : > { %v2793_v4 = vpop.eup %2792  ;;  %v765_v43 = vmul.f32 %v2791_v34, %v2408_v62 }
 0xa75   : > { %v764_v3 = vmul.f32 %v2793_v4, %v2407_v41 }
 0xa76   : > { %v767_v45 = vadd.f32 %v765_v43, %v751_v40  ;;  %v756_v43 = vld [vmem:[#allocation5] sm:$0xff] }
 0xa77   : > { %v766_v44 = vadd.f32 %v764_v3, %v750_v38 }
 0xa78   : > { %vm769_vm12 = vcmp.gt.f32.partialorder %v767_v45, 0.99 }
 0xa79   : > { %vm768_vm11 = vcmp.gt.f32.partialorder %v766_v44, 0.99  ;;  %v2410_v48 = vsel %vm769_vm12, 1.0, %v2853_v5 }
 0xa7a   : > { %v2409_v46 = vsel %vm768_vm11, 1.0, %v2853_v5  ;;  %v779_v51 = vmax.f32 %v2410_v48, %v777_v47 }
 0xa7b   : > { %v778_v49 = vmax.f32 %v2409_v46, %v777_v47  ;;  %v757_v47 = vld [vmem:[#allocation5 + $0x8] sm:$0xff] }
 0xa7c   : > { %v783_v53 = vsub.f32 1.0, %v779_v51  ;;  %v781_v7 = vmul.f32 %v2408_v62, %v779_v51 }
 0xa7d   : > { %v782_v52 = vsub.f32 1.0, %v778_v49 }
 0xa7e   : > { %v785_v56 = vmul.f32 %v2408_v62, %v783_v53 }
 0xa7f   : > { %v784_v55 = vmul.f32 %v2407_v41, %v782_v52 }
 0xa80   : > { %v787_v63 = vmul.f32 %v2791_v34, %v785_v56  ;;  %v801_v20 = vadd.f32 %v785_v56, %v755_v54 }
 0xa81   : > { %v786_v58 = vmul.f32 %v2793_v4, %v784_v55  ;;  %v800_v61 = vadd.f32 %v784_v55, %v754_v57 }
 0xa82   : > { %v789_v5 = vadd.f32 %v787_v63, %v751_v40  ;;  %v803_v22 = vadd.f32 %v801_v20, %v781_v7 }
 0xa83   : > { %v788_v0 = vadd.f32 %v786_v58, %v750_v38  ;;  %v2462_v38 = vld [vmem:[%s3431_s18] ss:$0 sm:$0xff] }
 0xa84   : > { %v791_v11 = vsub.f32 1.0, %v789_v5  ;;  %2270 = vst.msk [vmem:[%s3434_s21 + $0x8] sm:$0xff] %vm2262_vm13, %v803_v22 }
 0xa85   : > { %v790_v6 = vsub.f32 1.0, %v788_v0 }
 0xb3e   : > { %v2106_v13 = vpop.f32.mrb[40].mxu0 }
 0xb3f   : > { %v2107_v42 = vadd.f32 %v2451_v12, %v2106_v13  ;;  %v2663_v15 = vpop.f32.mrb[41].mxu0  ;;  %v753_v13 = vld [vmem:[%s3433_s20 + $0x8] sm:$0xff] }
 0xb40   : > { %v2109_v16 = vpop.f32.mrb[42].mxu0 }
 0xb41   : > { %v2110_v39 = vadd.f32 %v2451_v12, %v2109_v16  ;;  %v2664_v50 = vpop.f32.mrb[43].mxu0  ;;  %v2113_v17 = vmax.f32 %v2107_v42, 0.0  ;;  %v793_v42 = vmul.f32 %v791_v11, %v781_v7 }
 0xb43   : > { %v2114_v9 = vmax.f32 %v2110_v39, 0.0  ;;  %v795_v16 = vadd.f32 %v793_v42, %v753_v13 }
 0xb45   : > { %v2115_v8 = vpack.c.bf16 %v2114_v9, %v2113_v17  ;;  %v797_v50 = vmul.f32 %v795_v16, %v781_v7  ;;  %2268 = vst.msk [vmem:[%s3433_s20 + $0x8] sm:$0xff] %vm2262_vm13, %v795_v16 }
 0xb47   : > { %2674 = vmatmul.mubr.msk.bf16.vlgmr.msra.gmra.mrb[40].mxu1 %vm2155_vm8, %v2115_v8  ;;  %v805_v8 = vadd.f32 %v797_v50, %v787_v63  ;;  %v799_v19 = vadd.f32 %v797_v50, %v789_v5 }
 0xb49   : > { %2264 = vst.msk [vmem:[#allocation3 + $0x8] sm:$0xff] %vm2262_vm13, %v799_v19 }
 0xc1a   : > { %v2193_v29 = vpop.f32.mrb[40].mxu1 }
 0xc1b   : > { %v2194_v31 = vadd.f32 %v2455_v27, %v2193_v29  ;;  %v2675_v32 = vpop.f32.mrb[41].mxu1 }
 0xc1c   : > { %v2196_v1 = vpop.f32.mrb[42].mxu1 }
 0xc1d   : > { %v2197_v35 = vadd.f32 %v2455_v27, %v2196_v1  ;;  %v2676_v36 = vpop.f32.mrb[43].mxu1  ;;  %v3318_v21 = vadd.f32 %v2194_v31, %v2043_v59  ;;  %v2861_v59 = vmov 0  }
 0xc1e   : > { %2734 = vset.pattern.permute.xlu1 %v2861_v59  ;;  %2735 = vset.pattern.permute.xlu0 %v2861_v59 }
 0xc1f   : > { %v2204_v37 = vsel %vm722_vm3, %v3318_v21, 0.0  ;;  %v3322_v33 = vadd.f32 %v2197_v35, %v2044_v60  ;;  %v780_v60 = vmul.f32 %v2407_v41, %v778_v49 }
 0xc20   : > { %2205 = vadd.xlane.f32.xlu1 %v2204_v37 }
 0xc21   : > { %v2207_v26 = vsel %vm722_vm3, %v3322_v33, 0.0  ;;  %v802_v2 = vadd.f32 %v800_v61, %v780_v60  ;;  %v792_v12 = vmul.f32 %v790_v6, %v780_v60 }
 0xc22   : > { %2208 = vadd.xlane.f32.xlu0 %v2207_v26 }
 0xc23   : > { %2269 = vst.msk [vmem:[%s3434_s21] sm:$0xff] %vm2262_vm13, %v802_v2  ;;  %v794_v15 = vadd.f32 %v792_v12, %v752_v10 }
 0xc25   : > { %v796_v39 = vmul.f32 %v794_v15, %v780_v60  ;;  %2267 = vst.msk [vmem:[%s3433_s20] sm:$0xff] %vm2262_vm13, %v794_v15 }
 0xc27   : > { %v798_v17 = vadd.f32 %v796_v39, %v788_v0  ;;  %v804_v9 = vadd.f32 %v796_v39, %v786_v58 }
 0xc29   : > { %2263 = vst.msk [vmem:[#allocation3] sm:$0xff] %vm2262_vm13, %v798_v17 }
 0xcad   : > { %v2206_v14 = vpop.xlane.xlu1 %2205 }
 0xcae   : > { %v2210_v18 = vmul.f32 0.03125, %v2206_v14 }
 0xcaf   : > { %v2209_v23 = vpop.xlane.xlu0 %2208 }
 0xcb0   : > { %v2212_v24 = vsub.f32 %v3318_v21, %v2210_v18  ;;  %v2211_v25 = vmul.f32 0.03125, %v2209_v23 }
 0xcb2   : > { %v2213_v27 = vsub.f32 %v3322_v33, %v2211_v25  ;;  %v2214_v28 = vmul.f32 %v2212_v24, %v2212_v24  ;;  %v2461_v33 = vld [vmem:[%s3430_s17] ss:$0 sm:$0xff] }
 0xcb4   : > { %v2216_v29 = vsel %vm722_vm3, %v2214_v28, 0.0  ;;  %v2215_v30 = vmul.f32 %v2213_v27, %v2213_v27 }
 0xcb5   : > { %2217 = vadd.xlane.f32.xlu1 %v2216_v29 }
 0xcb6   : > { %v2219_v31 = vsel %vm722_vm3, %v2215_v30, 0.0 }
 0xcb7   : > { %2220 = vadd.xlane.f32.xlu0 %v2219_v31 }
 0xcc6   : > { %2248 = vperm.xlu1 %2734, %v804_v9  }
 0xccd   : > { %2253 = vperm.xlu0 %2735, %v805_v8  }
 0xd42   : > { %v2218_v32 = vpop.xlane.xlu1 %2217 }
 0xd43   : > { %v2222_v1 = vmul.f32 0.03125, %v2218_v32 }
 0xd44   : > { %v2221_v35 = vpop.xlane.xlu0 %2220 }
 0xd45   : > { %v2224_v36 = vadd.f32 1e-05, %v2222_v1  ;;  %v2223_v37 = vmul.f32 0.03125, %v2221_v35 }
 0xd46   : > { %v2249_v44 = vpop.permute.xlu1 %2248 }
 0xd47   : > { %2794 = vrsqrt.f32 %v2224_v36  ;;  %v2225_v21 = vadd.f32 1e-05, %v2223_v37 }
 0xd49   : > { %2796 = vrsqrt.f32 %v2225_v21 }
 0xd4c   : > { %v2254_v48 = vpop.permute.xlu0 %2253 }
 0xd51   : > { %v2795_v26 = vpop.eup %2794 }
 0xd52   : > { %v2228_v34 = vmul.f32 %v2795_v26, %v2212_v24 }
 0xd53   : > { %v2797_v4 = vpop.eup %2796 }
 0xd54   : > { %v2236_v40 = vmul.f32 %v2461_v33, %v2228_v34  ;;  %v2229_v41 = vmul.f32 %v2797_v4, %v2213_v27 }
 0xd56   : > { %v2244_v62 = vadd.f32 %v2462_v38, %v2236_v40  ;;  %v2237_v3 = vmul.f32 %v2461_v33, %v2229_v41 }
 0xd58   : > { %2260 = vst.msk [vmem:[#allocation2] sm:$0xff] %vm722_vm3, %v2244_v62  ;;  %v2256_v45 = vmul.f32 %v2249_v44, %v2244_v62  ;;  %v2245_v46 = vadd.f32 %v2462_v38, %v2237_v3 }
 0xd5a   : > { %v2258_v49 = vadd.f32 %v2256_v45, %v756_v43  ;;  %2261 = vst.msk [vmem:[#allocation2 + $0x8] sm:$0xff] %vm722_vm3, %v2245_v46  ;;  %v2257_v51 = vmul.f32 %v2254_v48, %v2245_v46 }
 0xd5c   : > { %2265 = vst.msk [vmem:[#allocation5] sm:$0xff] %vm722_vm3, %v2258_v49  ;;  %v2259_v52 = vadd.f32 %v2257_v51, %v757_v47 }
 0xd5e   : > { %2266 = vst.msk [vmem:[#allocation5 + $0x8] sm:$0xff] %vm722_vm3, %v2259_v52 }
 0xd5f   : > { %2811 = shalt.err (!%p2808_p13)
}
 0xd60   : > { %s2812_s27 = scalar_lea.hbm %s3432_s19, 256 }
 0xd61   : > { %p2813_p0 = scmp.ne.s32.totalorder %s3432_s19, %s2812_s27  ;;  %p2818_p3 = scmp.lt.u32.totalorder %s2812_s27, %s3432_s19 }
 0xd63   : > { %p2814_p1 = pnand %p2813_p0, %p3375_p6 }
 0xd65   : > { %p2815_p2 = pneg %p2814_p1 }
 0xd67   : > { %p2820_p4 = pnand %p2818_p3, %p2815_p2 }
 0xd69   : > { %2823 = shalt.err (!%p2820_p4)
}
 0xd6a   : > { %s2863_s1 = smov 128   ;;  %s3455_s5 = smov 8  }
 0xd6b   : > { %2678 = dma.vmem_to_hbm [thread:$0]  (%p3375_p6), %s2291_s30, 256, %s3432_s19, [#allocation6], %s2863_s1, %s2863_s1, %s3455_s5  }
 0xd6c   : > { %2837 = dma.done.wait (%p3375_p6), [#allocation6], 256  }
 0xd6d   : > { %2839 = vsyncadd (%p3375_p6), [#allocation6], 4294967040 }
 0xd6e PF: > { %s35_s28 = sadd.s32 1, %s2850_s28   ;;  %s3456_s27 = smov %s2846_s3 }
 0xd6f   : > { %p32_p5 = scmp.ge.s32.totalorder %s35_s28, 5   ;;  %s3457_s3 = smov %s3459_s0 }
 0xd71   :  { %34 = sbr.rel (!%p32_p5) target bundleno = 14 (0xe), region = 152 }
 0xd78   :  { %2330 = vsyncpa [#allocation6], 1 }
 0xd79   :  { %2332 = vsyncpa [#allocation6 + $0x1], 1 }

</bundles_post_ra>
